<compile_context>
chip_gen: v7x
topology: tpu7x:2x2x1
jax: 0.10.0
libtpu: 0.0.40
codegen_flags: <defaults>
</compile_context>

<pallas_src>
import jax
import jax.numpy as jnp
from jax.experimental import pallas as pl
from jax.experimental.pallas import tpu as pltpu


# --------------------------- fully fused GAT kernel ---------------------------

def make_fused_gat_kernel(layer_static):
    """Build a kernel that runs the whole GAT stack (all layers) inside VMEM.

    Kernel ref order: x, adj_bias, (w_aug, scale, shift) per layer, out.
      x_ref:       (n, fin)                node features
      adjb_ref:    (n, n) f32              additive mask: 0 on edge, -1e30 off
      w_ref[l]:    (fin_l, h_dim_l+2*heads) bf16 augmented weight [W | Wa_src | Wa_dst]
      scale_ref[l]:(1, out_dim_l) f32      folded affine (conv bias + eval BatchNorm)
      shift_ref[l]:(1, out_dim_l) f32
      out_ref:     (n, out_channels) f32
    """
    num_layers = len(layer_static)

    def kernel(*refs):
        x_ref, adjb_ref = refs[0], refs[1]
        out_ref = refs[-1]
        p_refs = refs[2:2 + 3 * num_layers]

        adj_bias = adjb_ref[...]                          # loaded ONCE for all layers
        h_in = x_ref[...].astype(jnp.bfloat16)

        for li in range(num_layers):                      # unrolled at trace time
            cfg = layer_static[li]
            heads, c = cfg["heads"], cfg["c"]
            concat, apply_bn_relu = cfg["concat"], cfg["apply_bn_relu"]
            h_dim = heads * c
            w_ref, scale_ref, shift_ref = p_refs[3 * li:3 * li + 3]

            # Projection on the MXU (bf16 operands, f32 accumulate). The augmented
            # columns give the per-node attention scalars for free.
            h_aug = jnp.dot(h_in, w_ref[...], preferred_element_type=jnp.float32)
            h = h_aug[:, :h_dim].astype(jnp.bfloat16)     # value; no scratch round-trip
            scal = h_aug[:, h_dim:]                       # (n, 2*heads): [a_src_* | a_dst_*]
            scal_t = scal.T                               # (2*heads, n): one small XLU transpose

            head_outs = []
            for hh in range(heads):                       # heads is tiny; unrolled
                a_src = scal_t[hh:hh + 1, :]                   # (1, n) over source nodes
                a_dst = scal[:, heads + hh:heads + hh + 1]     # (n, 1) over dest nodes
                e = a_dst + a_src                              # (n, n) logits
                e = jnp.where(e > 0, e, 0.2 * e)               # LeakyReLU(0.2)
                e = e + adj_bias                               # additive mask (no cmp/select)
                m = jnp.max(e, axis=-1, keepdims=True)
                p = jnp.exp(e - m)                             # non-edges underflow to 0
                denom = jnp.sum(p, axis=-1, keepdims=True)     # > 0 thanks to self-loops
                inv = pl.reciprocal(denom, approx=True)        # EUP slot, ~free
                # Aggregate on the MXU; normalize the (n, c) result, not (n, n) weights.
                agg = jnp.dot(p.astype(jnp.bfloat16), h[:, hh * c:(hh + 1) * c],
                              preferred_element_type=jnp.float32)   # (n, c) f32
                head_outs.append(agg * inv)

            if concat:
                res = jnp.concatenate(head_outs, axis=-1)  # (n, heads*c), lane-dense
            else:
                res = head_outs[0]
                for ho in head_outs[1:]:
                    res = res + ho
                res = res * (1.0 / float(heads))           # mean over heads

            # Epilogue: conv bias (+ eval-mode BatchNorm) folded into one affine;
            # ReLU only for hidden layers. Dropout is identity in eval mode.
            y = res * scale_ref[...] + shift_ref[...]
            if apply_bn_relu:
                y = jnp.maximum(y, 0.0)

            if li == num_layers - 1:
                out_ref[...] = y.astype(out_ref.dtype)
            else:
                h_in = y.astype(jnp.bfloat16)              # stays in VMEM / vregs

    return kernel


def fused_gat_forward(x, adj_bias, layer_params, layer_static):
    """One pallas_call for the whole stack; everything VMEM-resident."""
    n, fin = x.shape
    last = layer_static[-1]
    out_channels = (last["heads"] * last["c"]) if last["concat"] else last["c"]

    def full_spec(shape):
        return pl.BlockSpec(shape, lambda i, _s=shape: (0,) * len(_s))

    in_specs = [full_spec((n, fin)), full_spec((n, n))]
    flat_args = [x, adj_bias]
    for p in layer_params:
        in_specs += [full_spec(p["w_aug"].shape),
                     full_spec(p["scale"].shape),
                     full_spec(p["shift"].shape)]
        flat_args += [p["w_aug"], p["scale"], p["shift"]]

    kernel = make_fused_gat_kernel(layer_static)
    return pl.pallas_call(
        kernel,
        out_shape=jax.ShapeDtypeStruct((n, out_channels), jnp.float32),
        grid=(1,),                                          # whole model per invocation
        in_specs=in_specs,
        out_specs=full_spec((n, out_channels)),
        compiler_params=pltpu.CompilerParams(
            dimension_semantics=("arbitrary",)),
    )(*flat_args)


# ------------------------------ model glue ------------------------------------

def init_gat_params(key, in_channels, hidden_channels, out_channels, num_layers, heads):
    """Synthetic parameters mirroring the PyTorch module (eval mode).

    Returns (layer_static, layer_params):
      layer_static: python-level per-layer config (heads, c, concat, apply_bn_relu)
                    -- never passed through jit.
      layer_params: per-layer arrays only (jit-safe pytree).
    """
    def glorot(k, shape):
        fan_in, fan_out = shape[0], shape[-1]
        std = (2.0 / (fan_in + fan_out)) ** 0.5
        return std * jax.random.normal(k, shape, jnp.float32)

    dims = [(in_channels, hidden_channels, True)]
    for _ in range(num_layers - 2):
        dims.append((heads * hidden_channels, hidden_channels, True))
    dims.append((heads * hidden_channels, out_channels, False))

    eps = 1e-5
    layer_static, layer_params = [], []
    for li, (fin, c, concat) in enumerate(dims):
        key, k1, k2, k3 = jax.random.split(key, 4)
        W = glorot(k1, (fin, heads * c))
        att_src = glorot(k2, (heads, c))
        att_dst = glorot(k3, (heads, c))
        bias_dim = heads * c if concat else c
        bias = jnp.zeros((bias_dim,), jnp.float32)

        # Augment W with 2*heads columns so x @ W_aug also produces the per-node
        # attention scalars a_src[h] = h_h . att_src[h] (likewise a_dst).
        W3 = W.reshape(fin, heads, c)
        src_cols = jnp.einsum("fhc,hc->fh", W3, att_src)      # (fin, heads)
        dst_cols = jnp.einsum("fhc,hc->fh", W3, att_dst)      # (fin, heads)
        w_aug = jnp.concatenate([W, src_cols, dst_cols], axis=1).astype(jnp.bfloat16)

        is_last = li == len(dims) - 1
        if not is_last:
            key, kg, kb = jax.random.split(key, 3)
            f = heads * c
            gamma = 1.0 + 0.1 * jax.random.normal(kg, (f,), jnp.float32)
            beta = 0.1 * jax.random.normal(kb, (f,), jnp.float32)
            running_mean = jnp.zeros((f,), jnp.float32)
            running_var = jnp.ones((f,), jnp.float32)
            bn_scale = gamma / jnp.sqrt(running_var + eps)
            bn_shift = beta - running_mean * bn_scale
            scale = bn_scale                        # y = (res + bias)*s + t
            shift = bias * bn_scale + bn_shift      #   = res*s + (bias*s + t)
            apply_bn_relu = True
            out_dim = f
        else:
            scale = jnp.ones((c,), jnp.float32)
            shift = bias
            apply_bn_relu = False
            out_dim = c

        layer_params.append(dict(w_aug=w_aug,
                                 scale=scale.reshape(1, out_dim),
                                 shift=shift.reshape(1, out_dim)))
        layer_static.append(dict(heads=heads, c=c, concat=concat,
                                 apply_bn_relu=apply_bn_relu))
    return layer_static, layer_params


def build_gat_forward(layer_static):
    """Close over static per-layer config so only arrays flow through jit."""

    def fwd(x, adj, layer_params):
        # Additive adjacency bias: 0 on edges (incl. self-loops), -1e30 elsewhere.
        # One tiny elementwise op outside the kernel, computed once per call.
        adj_bias = jnp.where(adj > 0.0, 0.0, -1e30).astype(jnp.float32)
        return fused_gat_forward(x, adj_bias, layer_params, layer_static)

    return jax.jit(fwd)


# ---------------------------------- main ---------------------------------------

if __name__ == "__main__":
    N = 64            # nodes
    IN_CH = 16
    HIDDEN = 64       # heads * HIDDEN = 128 -> lane-dense hidden activations
    OUT_CH = 8
    HEADS = 2
    NUM_LAYERS = 3
    DROPOUT = 0.5     # eval mode -> identity

    key = jax.random.PRNGKey(0)
    key, kx, ka = jax.random.split(key, 3)

    x = jax.random.normal(kx, (N, IN_CH), jnp.float32)
    # Random sparse directed graph + self-loops (GATConv default add_self_loops=True).
    adj = (jax.random.uniform(ka, (N, N)) < 0.2).astype(jnp.float32)
    adj = jnp.maximum(adj, jnp.eye(N, dtype=jnp.float32))

    layer_static, layer_params = init_gat_params(key, IN_CH, HIDDEN, OUT_CH,
                                                 NUM_LAYERS, HEADS)
    gat_forward = build_gat_forward(layer_static)

    out = gat_forward(x, adj, layer_params)
    out = jax.block_until_ready(out)

    assert out.shape == (N, OUT_CH), out.shape
    assert bool(jnp.all(jnp.isfinite(out)))
    print("KERNEL_OK")
</pallas_src>

<mosaic_0001>
module attributes {stable_mosaic.version = 11 : i64} {
  func.func @kernel(%arg0: i32, %arg1: memref<64x16xf32, #tpu.memory_space<vmem>>, %arg2: memref<64x64xf32, #tpu.memory_space<vmem>>, %arg3: memref<16x132xbf16, #tpu.memory_space<vmem>>, %arg4: memref<1x128xf32, #tpu.memory_space<vmem>>, %arg5: memref<1x128xf32, #tpu.memory_space<vmem>>, %arg6: memref<128x132xbf16, #tpu.memory_space<vmem>>, %arg7: memref<1x128xf32, #tpu.memory_space<vmem>>, %arg8: memref<1x128xf32, #tpu.memory_space<vmem>>, %arg9: memref<128x20xbf16, #tpu.memory_space<vmem>>, %arg10: memref<1x8xf32, #tpu.memory_space<vmem>>, %arg11: memref<1x8xf32, #tpu.memory_space<vmem>>, %arg12: memref<64x8xf32, #tpu.memory_space<vmem>>) attributes {dimension_semantics = [#tpu.dimension_semantics<arbitrary>], iteration_bounds = array<i64: 1>, scalar_prefetch = 0 : i64, scratch_operands = 0 : i64, tpu.core_type = #tpu.core_type<tc>, window_params = [{pipeline_mode = #tpu.pipeline_mode<synchronous>, transform_indices = @transform_0, window_bounds = array<i64: 64, 16>}, {pipeline_mode = #tpu.pipeline_mode<synchronous>, transform_indices = @transform_1, window_bounds = array<i64: 64, 64>}, {pipeline_mode = #tpu.pipeline_mode<synchronous>, transform_indices = @transform_2, window_bounds = array<i64: 16, 132>}, {pipeline_mode = #tpu.pipeline_mode<synchronous>, transform_indices = @transform_3, window_bounds = array<i64: 1, 128>}, {pipeline_mode = #tpu.pipeline_mode<synchronous>, transform_indices = @transform_4, window_bounds = array<i64: 1, 128>}, {pipeline_mode = #tpu.pipeline_mode<synchronous>, transform_indices = @transform_5, window_bounds = array<i64: 128, 132>}, {pipeline_mode = #tpu.pipeline_mode<synchronous>, transform_indices = @transform_6, window_bounds = array<i64: 1, 128>}, {pipeline_mode = #tpu.pipeline_mode<synchronous>, transform_indices = @transform_7, window_bounds = array<i64: 1, 128>}, {pipeline_mode = #tpu.pipeline_mode<synchronous>, transform_indices = @transform_8, window_bounds = array<i64: 128, 20>}, {pipeline_mode = #tpu.pipeline_mode<synchronous>, transform_indices = @transform_9, window_bounds = array<i64: 1, 8>}, {pipeline_mode = #tpu.pipeline_mode<synchronous>, transform_indices = @transform_10, window_bounds = array<i64: 1, 8>}, {pipeline_mode = #tpu.pipeline_mode<synchronous>, transform_indices = @transform_11, window_bounds = array<i64: 64, 8>}]} {
    %c0 = arith.constant 0 : index
    %c0_0 = arith.constant 0 : index
    %0 = vector.load %arg2[%c0, %c0_0] : memref<64x64xf32, #tpu.memory_space<vmem>>, vector<64x64xf32>
    %c0_1 = arith.constant 0 : index
    %c0_2 = arith.constant 0 : index
    %1 = vector.load %arg1[%c0_1, %c0_2] : memref<64x16xf32, #tpu.memory_space<vmem>>, vector<64x16xf32>
    %2 = arith.truncf %1 : vector<64x16xf32> to vector<64x16xbf16>
    %c0_3 = arith.constant 0 : index
    %c0_4 = arith.constant 0 : index
    %3 = vector.load %arg3[%c0_3, %c0_4] : memref<16x132xbf16, #tpu.memory_space<vmem>>, vector<16x132xbf16>
    %cst = arith.constant dense<0.000000e+00> : vector<64x132xf32>
    %4 = tpu.matmul %2, %3, %cst {dimension_numbers = #tpu.dot_dimension_numbers<[1], [0], [0], [1], [0, 0, 1, 1], [], []>} : vector<64x16xbf16>, vector<16x132xbf16>, vector<64x132xf32> -> vector<64x132xf32>
    %5 = vector.extract_strided_slice %4 {offsets = [0, 0], sizes = [64, 128], strides = [1, 1]} : vector<64x132xf32> to vector<64x128xf32>
    %6 = arith.truncf %5 : vector<64x128xf32> to vector<64x128xbf16>
    %7 = vector.extract_strided_slice %4 {offsets = [0, 128], sizes = [64, 4], strides = [1, 1]} : vector<64x132xf32> to vector<64x4xf32>
    %8 = tpu.transpose %7, [1, 0] : vector<64x4xf32> -> vector<4x64xf32>
    %9 = vector.extract_strided_slice %8 {offsets = [0, 0], sizes = [1, 64], strides = [1, 1]} : vector<4x64xf32> to vector<1x64xf32>
    %10 = vector.extract_strided_slice %7 {offsets = [0, 2], sizes = [64, 1], strides = [1, 1]} : vector<64x4xf32> to vector<64x1xf32>
    %11 = vector.broadcast %10 : vector<64x1xf32> to vector<64x64xf32>
    %12 = vector.broadcast %9 : vector<1x64xf32> to vector<64x64xf32>
    %13 = arith.addf %11, %12 : vector<64x64xf32>
    %cst_5 = arith.constant 0.000000e+00 : f32
    %14 = vector.broadcast %cst_5 : f32 to vector<64x64xf32>
    %15 = arith.cmpf ogt, %13, %14 : vector<64x64xf32>
    %cst_6 = arith.constant 2.000000e-01 : f32
    %16 = vector.broadcast %cst_6 : f32 to vector<64x64xf32>
    %17 = arith.mulf %16, %13 : vector<64x64xf32>
    %18 = arith.select %15, %13, %17 : vector<64x64xi1>, vector<64x64xf32>
    %19 = arith.addf %18, %0 : vector<64x64xf32>
    %cst_7 = arith.constant dense<0xFF800000> : vector<64xf32>
    %20 = vector.multi_reduction <maximumf>, %19, %cst_7 [1] : vector<64x64xf32> to vector<64xf32>
    %21 = vector.shape_cast %20 : vector<64xf32> to vector<64x1xf32>
    %22 = vector.broadcast %21 : vector<64x1xf32> to vector<64x64xf32>
    %23 = arith.subf %19, %22 : vector<64x64xf32>
    %24 = math.exp %23 : vector<64x64xf32>
    %cst_8 = arith.constant dense<0.000000e+00> : vector<64xf32>
    %25 = vector.multi_reduction <add>, %24, %cst_8 [1] : vector<64x64xf32> to vector<64xf32>
    %26 = vector.shape_cast %25 : vector<64xf32> to vector<64x1xf32>
    %27 = tpu.reciprocal %26 {approx = true} : vector<64x1xf32> -> vector<64x1xf32>
    %28 = arith.truncf %24 : vector<64x64xf32> to vector<64x64xbf16>
    %29 = vector.extract_strided_slice %6 {offsets = [0, 0], sizes = [64, 64], strides = [1, 1]} : vector<64x128xbf16> to vector<64x64xbf16>
    %cst_9 = arith.constant dense<0.000000e+00> : vector<64x64xf32>
    %30 = tpu.matmul %28, %29, %cst_9 {dimension_numbers = #tpu.dot_dimension_numbers<[1], [0], [0], [1], [0, 0, 1, 1], [], []>} : vector<64x64xbf16>, vector<64x64xbf16>, vector<64x64xf32> -> vector<64x64xf32>
    %31 = vector.broadcast %27 : vector<64x1xf32> to vector<64x64xf32>
    %32 = arith.mulf %30, %31 : vector<64x64xf32>
    %33 = vector.extract_strided_slice %8 {offsets = [1, 0], sizes = [1, 64], strides = [1, 1]} : vector<4x64xf32> to vector<1x64xf32>
    %34 = vector.extract_strided_slice %7 {offsets = [0, 3], sizes = [64, 1], strides = [1, 1]} : vector<64x4xf32> to vector<64x1xf32>
    %35 = vector.broadcast %34 : vector<64x1xf32> to vector<64x64xf32>
    %36 = vector.broadcast %33 : vector<1x64xf32> to vector<64x64xf32>
    %37 = arith.addf %35, %36 : vector<64x64xf32>
    %cst_10 = arith.constant 0.000000e+00 : f32
    %38 = vector.broadcast %cst_10 : f32 to vector<64x64xf32>
    %39 = arith.cmpf ogt, %37, %38 : vector<64x64xf32>
    %cst_11 = arith.constant 2.000000e-01 : f32
    %40 = vector.broadcast %cst_11 : f32 to vector<64x64xf32>
    %41 = arith.mulf %40, %37 : vector<64x64xf32>
    %42 = arith.select %39, %37, %41 : vector<64x64xi1>, vector<64x64xf32>
    %43 = arith.addf %42, %0 : vector<64x64xf32>
    %cst_12 = arith.constant dense<0xFF800000> : vector<64xf32>
    %44 = vector.multi_reduction <maximumf>, %43, %cst_12 [1] : vector<64x64xf32> to vector<64xf32>
    %45 = vector.shape_cast %44 : vector<64xf32> to vector<64x1xf32>
    %46 = vector.broadcast %45 : vector<64x1xf32> to vector<64x64xf32>
    %47 = arith.subf %43, %46 : vector<64x64xf32>
    %48 = math.exp %47 : vector<64x64xf32>
    %cst_13 = arith.constant dense<0.000000e+00> : vector<64xf32>
    %49 = vector.multi_reduction <add>, %48, %cst_13 [1] : vector<64x64xf32> to vector<64xf32>
    %50 = vector.shape_cast %49 : vector<64xf32> to vector<64x1xf32>
    %51 = tpu.reciprocal %50 {approx = true} : vector<64x1xf32> -> vector<64x1xf32>
    %52 = arith.truncf %48 : vector<64x64xf32> to vector<64x64xbf16>
    %53 = vector.extract_strided_slice %6 {offsets = [0, 64], sizes = [64, 64], strides = [1, 1]} : vector<64x128xbf16> to vector<64x64xbf16>
    %cst_14 = arith.constant dense<0.000000e+00> : vector<64x64xf32>
    %54 = tpu.matmul %52, %53, %cst_14 {dimension_numbers = #tpu.dot_dimension_numbers<[1], [0], [0], [1], [0, 0, 1, 1], [], []>} : vector<64x64xbf16>, vector<64x64xbf16>, vector<64x64xf32> -> vector<64x64xf32>
    %55 = vector.broadcast %51 : vector<64x1xf32> to vector<64x64xf32>
    %56 = arith.mulf %54, %55 : vector<64x64xf32>
    %57 = tpu.concatenate %32, %56 in 1 : vector<64x64xf32>, vector<64x64xf32> -> vector<64x128xf32>
    %c0_15 = arith.constant 0 : index
    %c0_16 = arith.constant 0 : index
    %58 = vector.load %arg4[%c0_15, %c0_16] : memref<1x128xf32, #tpu.memory_space<vmem>>, vector<1x128xf32>
    %59 = vector.broadcast %58 : vector<1x128xf32> to vector<64x128xf32>
    %60 = arith.mulf %57, %59 : vector<64x128xf32>
    %c0_17 = arith.constant 0 : index
    %c0_18 = arith.constant 0 : index
    %61 = vector.load %arg5[%c0_17, %c0_18] : memref<1x128xf32, #tpu.memory_space<vmem>>, vector<1x128xf32>
    %62 = vector.broadcast %61 : vector<1x128xf32> to vector<64x128xf32>
    %63 = arith.addf %60, %62 : vector<64x128xf32>
    %cst_19 = arith.constant 0.000000e+00 : f32
    %64 = vector.broadcast %cst_19 : f32 to vector<64x128xf32>
    %65 = arith.maximumf %63, %64 : vector<64x128xf32>
    %66 = arith.truncf %65 : vector<64x128xf32> to vector<64x128xbf16>
    %c0_20 = arith.constant 0 : index
    %c0_21 = arith.constant 0 : index
    %67 = vector.load %arg6[%c0_20, %c0_21] : memref<128x132xbf16, #tpu.memory_space<vmem>>, vector<128x132xbf16>
    %cst_22 = arith.constant dense<0.000000e+00> : vector<64x132xf32>
    %68 = tpu.matmul %66, %67, %cst_22 {dimension_numbers = #tpu.dot_dimension_numbers<[1], [0], [0], [1], [0, 0, 1, 1], [], []>} : vector<64x128xbf16>, vector<128x132xbf16>, vector<64x132xf32> -> vector<64x132xf32>
    %69 = vector.extract_strided_slice %68 {offsets = [0, 0], sizes = [64, 128], strides = [1, 1]} : vector<64x132xf32> to vector<64x128xf32>
    %70 = arith.truncf %69 : vector<64x128xf32> to vector<64x128xbf16>
    %71 = vector.extract_strided_slice %68 {offsets = [0, 128], sizes = [64, 4], strides = [1, 1]} : vector<64x132xf32> to vector<64x4xf32>
    %72 = tpu.transpose %71, [1, 0] : vector<64x4xf32> -> vector<4x64xf32>
    %73 = vector.extract_strided_slice %72 {offsets = [0, 0], sizes = [1, 64], strides = [1, 1]} : vector<4x64xf32> to vector<1x64xf32>
    %74 = vector.extract_strided_slice %71 {offsets = [0, 2], sizes = [64, 1], strides = [1, 1]} : vector<64x4xf32> to vector<64x1xf32>
    %75 = vector.broadcast %74 : vector<64x1xf32> to vector<64x64xf32>
    %76 = vector.broadcast %73 : vector<1x64xf32> to vector<64x64xf32>
    %77 = arith.addf %75, %76 : vector<64x64xf32>
    %cst_23 = arith.constant 0.000000e+00 : f32
    %78 = vector.broadcast %cst_23 : f32 to vector<64x64xf32>
    %79 = arith.cmpf ogt, %77, %78 : vector<64x64xf32>
    %cst_24 = arith.constant 2.000000e-01 : f32
    %80 = vector.broadcast %cst_24 : f32 to vector<64x64xf32>
    %81 = arith.mulf %80, %77 : vector<64x64xf32>
    %82 = arith.select %79, %77, %81 : vector<64x64xi1>, vector<64x64xf32>
    %83 = arith.addf %82, %0 : vector<64x64xf32>
    %cst_25 = arith.constant dense<0xFF800000> : vector<64xf32>
    %84 = vector.multi_reduction <maximumf>, %83, %cst_25 [1] : vector<64x64xf32> to vector<64xf32>
    %85 = vector.shape_cast %84 : vector<64xf32> to vector<64x1xf32>
    %86 = vector.broadcast %85 : vector<64x1xf32> to vector<64x64xf32>
    %87 = arith.subf %83, %86 : vector<64x64xf32>
    %88 = math.exp %87 : vector<64x64xf32>
    %cst_26 = arith.constant dense<0.000000e+00> : vector<64xf32>
    %89 = vector.multi_reduction <add>, %88, %cst_26 [1] : vector<64x64xf32> to vector<64xf32>
    %90 = vector.shape_cast %89 : vector<64xf32> to vector<64x1xf32>
    %91 = tpu.reciprocal %90 {approx = true} : vector<64x1xf32> -> vector<64x1xf32>
    %92 = arith.truncf %88 : vector<64x64xf32> to vector<64x64xbf16>
    %93 = vector.extract_strided_slice %70 {offsets = [0, 0], sizes = [64, 64], strides = [1, 1]} : vector<64x128xbf16> to vector<64x64xbf16>
    %cst_27 = arith.constant dense<0.000000e+00> : vector<64x64xf32>
    %94 = tpu.matmul %92, %93, %cst_27 {dimension_numbers = #tpu.dot_dimension_numbers<[1], [0], [0], [1], [0, 0, 1, 1], [], []>} : vector<64x64xbf16>, vector<64x64xbf16>, vector<64x64xf32> -> vector<64x64xf32>
    %95 = vector.broadcast %91 : vector<64x1xf32> to vector<64x64xf32>
    %96 = arith.mulf %94, %95 : vector<64x64xf32>
    %97 = vector.extract_strided_slice %72 {offsets = [1, 0], sizes = [1, 64], strides = [1, 1]} : vector<4x64xf32> to vector<1x64xf32>
    %98 = vector.extract_strided_slice %71 {offsets = [0, 3], sizes = [64, 1], strides = [1, 1]} : vector<64x4xf32> to vector<64x1xf32>
    %99 = vector.broadcast %98 : vector<64x1xf32> to vector<64x64xf32>
    %100 = vector.broadcast %97 : vector<1x64xf32> to vector<64x64xf32>
    %101 = arith.addf %99, %100 : vector<64x64xf32>
    %cst_28 = arith.constant 0.000000e+00 : f32
    %102 = vector.broadcast %cst_28 : f32 to vector<64x64xf32>
    %103 = arith.cmpf ogt, %101, %102 : vector<64x64xf32>
    %cst_29 = arith.constant 2.000000e-01 : f32
    %104 = vector.broadcast %cst_29 : f32 to vector<64x64xf32>
    %105 = arith.mulf %104, %101 : vector<64x64xf32>
    %106 = arith.select %103, %101, %105 : vector<64x64xi1>, vector<64x64xf32>
    %107 = arith.addf %106, %0 : vector<64x64xf32>
    %cst_30 = arith.constant dense<0xFF800000> : vector<64xf32>
    %108 = vector.multi_reduction <maximumf>, %107, %cst_30 [1] : vector<64x64xf32> to vector<64xf32>
    %109 = vector.shape_cast %108 : vector<64xf32> to vector<64x1xf32>
    %110 = vector.broadcast %109 : vector<64x1xf32> to vector<64x64xf32>
    %111 = arith.subf %107, %110 : vector<64x64xf32>
    %112 = math.exp %111 : vector<64x64xf32>
    %cst_31 = arith.constant dense<0.000000e+00> : vector<64xf32>
    %113 = vector.multi_reduction <add>, %112, %cst_31 [1] : vector<64x64xf32> to vector<64xf32>
    %114 = vector.shape_cast %113 : vector<64xf32> to vector<64x1xf32>
    %115 = tpu.reciprocal %114 {approx = true} : vector<64x1xf32> -> vector<64x1xf32>
    %116 = arith.truncf %112 : vector<64x64xf32> to vector<64x64xbf16>
    %117 = vector.extract_strided_slice %70 {offsets = [0, 64], sizes = [64, 64], strides = [1, 1]} : vector<64x128xbf16> to vector<64x64xbf16>
    %cst_32 = arith.constant dense<0.000000e+00> : vector<64x64xf32>
    %118 = tpu.matmul %116, %117, %cst_32 {dimension_numbers = #tpu.dot_dimension_numbers<[1], [0], [0], [1], [0, 0, 1, 1], [], []>} : vector<64x64xbf16>, vector<64x64xbf16>, vector<64x64xf32> -> vector<64x64xf32>
    %119 = vector.broadcast %115 : vector<64x1xf32> to vector<64x64xf32>
    %120 = arith.mulf %118, %119 : vector<64x64xf32>
    %121 = tpu.concatenate %96, %120 in 1 : vector<64x64xf32>, vector<64x64xf32> -> vector<64x128xf32>
    %c0_33 = arith.constant 0 : index
    %c0_34 = arith.constant 0 : index
    %122 = vector.load %arg7[%c0_33, %c0_34] : memref<1x128xf32, #tpu.memory_space<vmem>>, vector<1x128xf32>
    %123 = vector.broadcast %122 : vector<1x128xf32> to vector<64x128xf32>
    %124 = arith.mulf %121, %123 : vector<64x128xf32>
    %c0_35 = arith.constant 0 : index
    %c0_36 = arith.constant 0 : index
    %125 = vector.load %arg8[%c0_35, %c0_36] : memref<1x128xf32, #tpu.memory_space<vmem>>, vector<1x128xf32>
    %126 = vector.broadcast %125 : vector<1x128xf32> to vector<64x128xf32>
    %127 = arith.addf %124, %126 : vector<64x128xf32>
    %cst_37 = arith.constant 0.000000e+00 : f32
    %128 = vector.broadcast %cst_37 : f32 to vector<64x128xf32>
    %129 = arith.maximumf %127, %128 : vector<64x128xf32>
    %130 = arith.truncf %129 : vector<64x128xf32> to vector<64x128xbf16>
    %c0_38 = arith.constant 0 : index
    %c0_39 = arith.constant 0 : index
    %131 = vector.load %arg9[%c0_38, %c0_39] : memref<128x20xbf16, #tpu.memory_space<vmem>>, vector<128x20xbf16>
    %cst_40 = arith.constant dense<0.000000e+00> : vector<64x20xf32>
    %132 = tpu.matmul %130, %131, %cst_40 {dimension_numbers = #tpu.dot_dimension_numbers<[1], [0], [0], [1], [0, 0, 1, 1], [], []>} : vector<64x128xbf16>, vector<128x20xbf16>, vector<64x20xf32> -> vector<64x20xf32>
    %133 = vector.extract_strided_slice %132 {offsets = [0, 0], sizes = [64, 16], strides = [1, 1]} : vector<64x20xf32> to vector<64x16xf32>
    %134 = arith.truncf %133 : vector<64x16xf32> to vector<64x16xbf16>
    %135 = vector.extract_strided_slice %132 {offsets = [0, 16], sizes = [64, 4], strides = [1, 1]} : vector<64x20xf32> to vector<64x4xf32>
    %136 = tpu.transpose %135, [1, 0] : vector<64x4xf32> -> vector<4x64xf32>
    %137 = vector.extract_strided_slice %136 {offsets = [0, 0], sizes = [1, 64], strides = [1, 1]} : vector<4x64xf32> to vector<1x64xf32>
    %138 = vector.extract_strided_slice %135 {offsets = [0, 2], sizes = [64, 1], strides = [1, 1]} : vector<64x4xf32> to vector<64x1xf32>
    %139 = vector.broadcast %138 : vector<64x1xf32> to vector<64x64xf32>
    %140 = vector.broadcast %137 : vector<1x64xf32> to vector<64x64xf32>
    %141 = arith.addf %139, %140 : vector<64x64xf32>
    %cst_41 = arith.constant 0.000000e+00 : f32
    %142 = vector.broadcast %cst_41 : f32 to vector<64x64xf32>
    %143 = arith.cmpf ogt, %141, %142 : vector<64x64xf32>
    %cst_42 = arith.constant 2.000000e-01 : f32
    %144 = vector.broadcast %cst_42 : f32 to vector<64x64xf32>
    %145 = arith.mulf %144, %141 : vector<64x64xf32>
    %146 = arith.select %143, %141, %145 : vector<64x64xi1>, vector<64x64xf32>
    %147 = arith.addf %146, %0 : vector<64x64xf32>
    %cst_43 = arith.constant dense<0xFF800000> : vector<64xf32>
    %148 = vector.multi_reduction <maximumf>, %147, %cst_43 [1] : vector<64x64xf32> to vector<64xf32>
    %149 = vector.shape_cast %148 : vector<64xf32> to vector<64x1xf32>
    %150 = vector.broadcast %149 : vector<64x1xf32> to vector<64x64xf32>
    %151 = arith.subf %147, %150 : vector<64x64xf32>
    %152 = math.exp %151 : vector<64x64xf32>
    %cst_44 = arith.constant dense<0.000000e+00> : vector<64xf32>
    %153 = vector.multi_reduction <add>, %152, %cst_44 [1] : vector<64x64xf32> to vector<64xf32>
    %154 = vector.shape_cast %153 : vector<64xf32> to vector<64x1xf32>
    %155 = tpu.reciprocal %154 {approx = true} : vector<64x1xf32> -> vector<64x1xf32>
    %156 = arith.truncf %152 : vector<64x64xf32> to vector<64x64xbf16>
    %157 = vector.extract_strided_slice %134 {offsets = [0, 0], sizes = [64, 8], strides = [1, 1]} : vector<64x16xbf16> to vector<64x8xbf16>
    %cst_45 = arith.constant dense<0.000000e+00> : vector<64x8xf32>
    %158 = tpu.matmul %156, %157, %cst_45 {dimension_numbers = #tpu.dot_dimension_numbers<[1], [0], [0], [1], [0, 0, 1, 1], [], []>} : vector<64x64xbf16>, vector<64x8xbf16>, vector<64x8xf32> -> vector<64x8xf32>
    %159 = vector.broadcast %155 : vector<64x1xf32> to vector<64x8xf32>
    %160 = arith.mulf %158, %159 : vector<64x8xf32>
    %161 = vector.extract_strided_slice %136 {offsets = [1, 0], sizes = [1, 64], strides = [1, 1]} : vector<4x64xf32> to vector<1x64xf32>
    %162 = vector.extract_strided_slice %135 {offsets = [0, 3], sizes = [64, 1], strides = [1, 1]} : vector<64x4xf32> to vector<64x1xf32>
    %163 = vector.broadcast %162 : vector<64x1xf32> to vector<64x64xf32>
    %164 = vector.broadcast %161 : vector<1x64xf32> to vector<64x64xf32>
    %165 = arith.addf %163, %164 : vector<64x64xf32>
    %cst_46 = arith.constant 0.000000e+00 : f32
    %166 = vector.broadcast %cst_46 : f32 to vector<64x64xf32>
    %167 = arith.cmpf ogt, %165, %166 : vector<64x64xf32>
    %cst_47 = arith.constant 2.000000e-01 : f32
    %168 = vector.broadcast %cst_47 : f32 to vector<64x64xf32>
    %169 = arith.mulf %168, %165 : vector<64x64xf32>
    %170 = arith.select %167, %165, %169 : vector<64x64xi1>, vector<64x64xf32>
    %171 = arith.addf %170, %0 : vector<64x64xf32>
    %cst_48 = arith.constant dense<0xFF800000> : vector<64xf32>
    %172 = vector.multi_reduction <maximumf>, %171, %cst_48 [1] : vector<64x64xf32> to vector<64xf32>
    %173 = vector.shape_cast %172 : vector<64xf32> to vector<64x1xf32>
    %174 = vector.broadcast %173 : vector<64x1xf32> to vector<64x64xf32>
    %175 = arith.subf %171, %174 : vector<64x64xf32>
    %176 = math.exp %175 : vector<64x64xf32>
    %cst_49 = arith.constant dense<0.000000e+00> : vector<64xf32>
    %177 = vector.multi_reduction <add>, %176, %cst_49 [1] : vector<64x64xf32> to vector<64xf32>
    %178 = vector.shape_cast %177 : vector<64xf32> to vector<64x1xf32>
    %179 = tpu.reciprocal %178 {approx = true} : vector<64x1xf32> -> vector<64x1xf32>
    %180 = arith.truncf %176 : vector<64x64xf32> to vector<64x64xbf16>
    %181 = vector.extract_strided_slice %134 {offsets = [0, 8], sizes = [64, 8], strides = [1, 1]} : vector<64x16xbf16> to vector<64x8xbf16>
    %cst_50 = arith.constant dense<0.000000e+00> : vector<64x8xf32>
    %182 = tpu.matmul %180, %181, %cst_50 {dimension_numbers = #tpu.dot_dimension_numbers<[1], [0], [0], [1], [0, 0, 1, 1], [], []>} : vector<64x64xbf16>, vector<64x8xbf16>, vector<64x8xf32> -> vector<64x8xf32>
    %183 = vector.broadcast %179 : vector<64x1xf32> to vector<64x8xf32>
    %184 = arith.mulf %182, %183 : vector<64x8xf32>
    %185 = arith.addf %160, %184 : vector<64x8xf32>
    %cst_51 = arith.constant 5.000000e-01 : f32
    %186 = vector.broadcast %cst_51 : f32 to vector<64x8xf32>
    %187 = arith.mulf %185, %186 : vector<64x8xf32>
    %c0_52 = arith.constant 0 : index
    %c0_53 = arith.constant 0 : index
    %188 = vector.load %arg10[%c0_52, %c0_53] : memref<1x8xf32, #tpu.memory_space<vmem>>, vector<1x8xf32>
    %189 = vector.broadcast %188 : vector<1x8xf32> to vector<64x8xf32>
    %190 = arith.mulf %187, %189 : vector<64x8xf32>
    %c0_54 = arith.constant 0 : index
    %c0_55 = arith.constant 0 : index
    %191 = vector.load %arg11[%c0_54, %c0_55] : memref<1x8xf32, #tpu.memory_space<vmem>>, vector<1x8xf32>
    %192 = vector.broadcast %191 : vector<1x8xf32> to vector<64x8xf32>
    %193 = arith.addf %190, %192 : vector<64x8xf32>
    %c0_56 = arith.constant 0 : index
    %c0_57 = arith.constant 0 : index
    %194 = vector.load %arg12[%c0_56, %c0_57] : memref<64x8xf32, #tpu.memory_space<vmem>>, vector<64x8xf32>
    tpu.vector_store %arg12[%c0_56, %c0_57], %193 {strides = array<i32>} : memref<64x8xf32, #tpu.memory_space<vmem>>, vector<64x8xf32>,
    return
  }
  func.func @transform_0(%arg0: i32) -> (i32, i32) {
    %c0_i32 = arith.constant 0 : i32
    %c0_i32_0 = arith.constant 0 : i32
    %c0_i32_1 = arith.constant 0 : i32
    return %c0_i32, %c0_i32_0 : i32, i32
  }
  func.func @transform_1(%arg0: i32) -> (i32, i32) {
    %c0_i32 = arith.constant 0 : i32
    %c0_i32_0 = arith.constant 0 : i32
    %c0_i32_1 = arith.constant 0 : i32
    return %c0_i32, %c0_i32_0 : i32, i32
  }
  func.func @transform_2(%arg0: i32) -> (i32, i32) {
    %c0_i32 = arith.constant 0 : i32
    %c0_i32_0 = arith.constant 0 : i32
    %c0_i32_1 = arith.constant 0 : i32
    return %c0_i32, %c0_i32_0 : i32, i32
  }
  func.func @transform_3(%arg0: i32) -> (i32, i32) {
    %c0_i32 = arith.constant 0 : i32
    %c0_i32_0 = arith.constant 0 : i32
    %c0_i32_1 = arith.constant 0 : i32
    return %c0_i32, %c0_i32_0 : i32, i32
  }
  func.func @transform_4(%arg0: i32) -> (i32, i32) {
    %c0_i32 = arith.constant 0 : i32
    %c0_i32_0 = arith.constant 0 : i32
    %c0_i32_1 = arith.constant 0 : i32
    return %c0_i32, %c0_i32_0 : i32, i32
  }
  func.func @transform_5(%arg0: i32) -> (i32, i32) {
    %c0_i32 = arith.constant 0 : i32
    %c0_i32_0 = arith.constant 0 : i32
    %c0_i32_1 = arith.constant 0 : i32
    return %c0_i32, %c0_i32_0 : i32, i32
  }
  func.func @transform_6(%arg0: i32) -> (i32, i32) {
    %c0_i32 = arith.constant 0 : i32
    %c0_i32_0 = arith.constant 0 : i32
    %c0_i32_1 = arith.constant 0 : i32
    return %c0_i32, %c0_i32_0 : i32, i32
  }
  func.func @transform_7(%arg0: i32) -> (i32, i32) {
    %c0_i32 = arith.constant 0 : i32
    %c0_i32_0 = arith.constant 0 : i32
    %c0_i32_1 = arith.constant 0 : i32
    return %c0_i32, %c0_i32_0 : i32, i32
  }
  func.func @transform_8(%arg0: i32) -> (i32, i32) {
    %c0_i32 = arith.constant 0 : i32
    %c0_i32_0 = arith.constant 0 : i32
    %c0_i32_1 = arith.constant 0 : i32
    return %c0_i32, %c0_i32_0 : i32, i32
  }
  func.func @transform_9(%arg0: i32) -> (i32, i32) {
    %c0_i32 = arith.constant 0 : i32
    %c0_i32_0 = arith.constant 0 : i32
    %c0_i32_1 = arith.constant 0 : i32
    return %c0_i32, %c0_i32_0 : i32, i32
  }
  func.func @transform_10(%arg0: i32) -> (i32, i32) {
    %c0_i32 = arith.constant 0 : i32
    %c0_i32_0 = arith.constant 0 : i32
    %c0_i32_1 = arith.constant 0 : i32
    return %c0_i32, %c0_i32_0 : i32, i32
  }
  func.func @transform_11(%arg0: i32) -> (i32, i32) {
    %c0_i32 = arith.constant 0 : i32
    %c0_i32_0 = arith.constant 0 : i32
    %c0_i32_1 = arith.constant 0 : i32
    return %c0_i32, %c0_i32_0 : i32, i32
  }
}

</mosaic_0001>

<bundles_post_ra>
// kernel: fwd.1
= control target key start
LH: loop header
LB: loop body
LE: loop exit
PB: predicated region body
PF: predicated region fallthrough
CT: control target
= control target key end

     0   :  { %v2885_v1 = vmov 0   ;;  %vm71_vm0 = vcmask 130048   ;;  %v2886_v15 = vmov 2   ;;  %v2887_v16 = vmov 3   ;;  %s3913_s2 = inlined_call_operand.vmem [shape: bf16[16,132], index: 2, kind: input, shape index: {}]   ;;  %s3914_s0 = inlined_call_operand.vmem [shape: f32[64,16], index: 0, kind: input, shape index: {}]   ;;  %s3915_s1 = inlined_call_operand.vmem [shape: f32[64,64], index: 1, kind: input, shape index: {}]   ;;  %s3916_s5 = inlined_call_operand.vmem [shape: bf16[128,132], index: 5, kind: input, shape index: {}]   ;;  %s3917_s3 = inlined_call_operand.vmem [shape: f32[1,128], index: 3, kind: input, shape index: {}]   ;;  %s3918_s4 = inlined_call_operand.vmem [shape: f32[1,128], index: 4, kind: input, shape index: {}]   ;;  %s3919_s8 = inlined_call_operand.vmem [shape: bf16[128,20], index: 8, kind: input, shape index: {}]   ;;  %s3920_s6 = inlined_call_operand.vmem [shape: f32[1,128], index: 6, kind: input, shape index: {}]   ;;  %s3921_s7 = inlined_call_operand.vmem [shape: f32[1,128], index: 7, kind: input, shape index: {}]   ;;  %s3922_s9 = inlined_call_operand.vmem [shape: f32[1,8], index: 9, kind: input, shape index: {}]   ;;  %s3923_s10 = inlined_call_operand.vmem [shape: f32[1,8], index: 10, kind: input, shape index: {}]   ;;  %s3924_s11 = inlined_call_operand.vmem [shape: f32[64,8], index: 11, kind: output, shape index: {}]  }
   0x1   :  { %v2642_v0 = vld [vmem:[%s3913_s2 + $0x4] ss:$8 sps:$4 sm:$0xff]   ;;  %116 = vmatprep.mubr.bf16.mxu0 %v2885_v1  ;;  %v2644_v2 = vld [vmem:[%s3913_s2] ss:$8 sps:$4 sm:$0xff]   ;;  %v49_v6 = vld [vmem:[%s3914_s0 + $0x10] sm:$0xff]  ;;  %2602 = vset.pattern.permute.xlu0 %v2886_v15  ;;  %v233_v49 = vlaneseq  ;;  %vm277_vm1 = vcmask 523264  }
   0x2   :  { %v47_v3 = vld [vmem:[%s3914_s0] sm:$0xff]  ;;  %v48_v4 = vld [vmem:[%s3914_s0 + $0x8] sm:$0xff]  ;;  %84 = vmatprep.subr.bf16.mxu0 %v2642_v0  ;;  %v50_v7 = vld [vmem:[%s3914_s0 + $0x18] sm:$0xff]  ;;  %2605 = vset.pattern.permute.xlu1 %v2887_v16 }
   0x3   :  { %v55_v5 = vpack.c.bf16 %v48_v4, %v47_v3  ;;  %85 = vmatpush1.bf16.msra.mxu0 %v2644_v2  ;;  %v56_v8 = vpack.c.bf16 %v50_v7, %v49_v6  ;;  %v51_v9 = vld [vmem:[%s3914_s0 + $0x20] sm:$0xff]  ;;  %v52_v10 = vld [vmem:[%s3914_s0 + $0x28] sm:$0xff]  ;;  %v53_v12 = vld [vmem:[%s3914_s0 + $0x30] sm:$0xff]  ;;  %v234_v52 = vshrl.u32 %v233_v49, 7 }
   0x4   :  { %v57_v11 = vpack.c.bf16 %v52_v10, %v51_v9  ;;  %v54_v13 = vld [vmem:[%s3914_s0 + $0x38] sm:$0xff]  ;;  %s2888_s0 = smov 64   ;;  %v45_v2 = vld [vmem:[%s3915_s1 + $0x30] sm:$0xff]  ;;  %v39_v3 = vld [vmem:[%s3915_s1] sm:$0xff] }
   0x5   :  { %v58_v14 = vpack.c.bf16 %v54_v13, %v53_v12  ;;  %v3036_v55 = vsub.s32 0, %v234_v52  ;;  %v3038_v56 = vsub.s32 1, %v234_v52  ;;  %v3100_v52 = vld [vmem:[%s3915_s1 + $0x10] sm:$0xff] }
   0x6   :  { %2355 = vmatmul.mubr.msk.bf16.vlgmr.msra.gmra.mrb[0].mxu0 %vm71_vm0, %v55_v5 }
   0x7   :  { %126 = vmatprep.mubr.bf16.mxu0 %v2885_v1 }
   0xe   :  { %2356 = vmatmul.mubr.msk.bf16.gmra.mrb[4].mxu0 %vm71_vm0, %v56_v8 }
   0xf   :  { %136 = vmatprep.mubr.bf16.mxu0 %v2885_v1 }
  0x16   :  { %2357 = vmatmul.mubr.msk.bf16.gmra.mrb[8].mxu0 %vm71_vm0, %v57_v11 }
  0x17   :  { %146 = vmatprep.mubr.bf16.mxu0 %v2885_v1 }
  0x1e   :  { %2358 = vmatmul.mubr.msk.bf16.gmra.mrb[12].mxu0 %vm71_vm0, %v58_v14 }
  0x1f   :  { %918 = vmatprep.mubr.bf16.mxu0 %v2885_v1 }
  0xd9   :  { %v118_v17 = vpop.f32.mrb[0].mxu0 }
  0xda   :  { %v120_v18 = vpop.f32.mrb[1].mxu0 }
  0xdb   :  { %195 = vperm.xlu0 %2602, %v120_v18   ;;  %v122_v19 = vpop.f32.mrb[2].mxu0 }
  0xdc   :  { %v157_v20 = vpack.c.bf16 %v122_v19, %v118_v17  ;;  %v124_v21 = vpop.f32.mrb[3].mxu0 }
  0xdd   :  { %452 = vperm.xlu1 %2605, %v124_v21  }
  0xde   :  { %2473 = vmatprep.subr.bf16.mxu1 %v157_v20 }
  0xdf   :  { %2603 = vset.pattern.permute.xlu0 %v2887_v16  ;;  %2474 = vmatpush3.bf16.msra.mxu1 %v157_v20 }
  0xe0   :  { %448 = vperm.xlu0 %2603, %v120_v18  }
  0xe1   :  { %v128_v22 = vpop.f32.mrb[4].mxu0  ;;  %2606 = vset.pattern.permute.xlu1 %v2886_v15 }
  0xe2   :  { %v130_v23 = vpop.f32.mrb[5].mxu0 }
  0xe3   :  { %205 = vperm.xlu1 %2606, %v130_v23   ;;  %v132_v24 = vpop.f32.mrb[6].mxu0 }
  0xe4   :  { %v2996_v25 = vpack.c.bf16 %v132_v24, %v128_v22  ;;  %2604 = vset.pattern.permute.xlu0 %v2886_v15  ;;  %v134_v26 = vpop.f32.mrb[7].mxu0 }
  0xe5   :  { %200 = vperm.xlu0 %2604, %v124_v21  }
  0xe6   :  { %2475 = vmatprep.subr.bf16.mxu1 %v2996_v25 }
  0xe7   :  { %2607 = vset.pattern.permute.xlu1 %v2887_v16  ;;  %2476 = vmatpush3.bf16.msra.mxu1 %v2996_v25 }
  0xe8   :  { %456 = vperm.xlu1 %2607, %v130_v23  }
  0xe9   :  { %611 = vrot.lane.b32.xlu0 %v157_v20, %s2888_s0  ;;  %v138_v27 = vpop.f32.mrb[8].mxu0 }
  0xea   :  { %v140_v28 = vpop.f32.mrb[9].mxu0  ;;  %2609 = vset.pattern.permute.xlu0 %v2887_v16 }
  0xeb   :  { %v142_v29 = vpop.f32.mrb[10].mxu0 }
  0xec   :  { %v3004_v30 = vpack.c.bf16 %v142_v29, %v138_v27  ;;  %2608 = vset.pattern.permute.xlu1 %v2886_v15  ;;  %v144_v31 = vpop.f32.mrb[11].mxu0 }
  0xed   :  { %460 = vperm.xlu0 %2609, %v134_v26   ;;  %210 = vperm.xlu1 %2608, %v134_v26  }
  0xee   :  { %2477 = vmatprep.subr.bf16.mxu1 %v3004_v30 }
  0xef   :  { %2478 = vmatpush3.bf16.msra.mxu1 %v3004_v30 }
  0xf1   :  { %2610 = vset.pattern.permute.xlu0 %v2886_v15  ;;  %220 = vperm.xlu1 %2608, %v144_v31   ;;  %v148_v32 = vpop.f32.mrb[12].mxu0 }
  0xf2   :  { %215 = vperm.xlu0 %2610, %v140_v28   ;;  %v150_v33 = vpop.f32.mrb[13].mxu0 }
  0xf3   :  { %v152_v34 = vpop.f32.mrb[14].mxu0 }
  0xf4   :  { %v3010_v35 = vpack.c.bf16 %v152_v34, %v148_v32  ;;  %v154_v36 = vpop.f32.mrb[15].mxu0 }
  0xf5   :  { %230 = vperm.xlu1 %2608, %v154_v36  }
  0xf6   :  { %2611 = vset.pattern.permute.xlu0 %v2887_v16  ;;  %2479 = vmatprep.subr.bf16.mxu1 %v3010_v35 }
  0xf7   :  { %464 = vperm.xlu0 %2611, %v140_v28   ;;  %2480 = vmatpush3.bf16.msra.mxu1 %v3010_v35 }
  0xfb   :  { %468 = vperm.xlu0 %2611, %v144_v31  }
  0xff   :  { %2612 = vset.pattern.permute.xlu0 %v2886_v15 }
 0x100   :  { %225 = vperm.xlu0 %2612, %v150_v33  }
 0x104   :  { %2613 = vset.pattern.permute.xlu0 %v2887_v16 }
 0x105   :  { %472 = vperm.xlu0 %2613, %v150_v33  }
 0x109   :  { %476 = vperm.xlu0 %2613, %v154_v36  }
 0x11e   :  { %161 = vxpose.xlu1.b32.start [1/8] (short) (narrow) %v120_v18, 8 }
 0x122   :  { %162 = vxpose.xlu1.b32.cont [2/8] (short) (narrow) %v124_v21, 8 }
 0x126   :  { %163 = vxpose.xlu1.b32.cont [3/8] (short) (narrow) %v130_v23, 8 }
 0x12a   :  { %164 = vxpose.xlu1.b32.cont [4/8] (short) (narrow) %v134_v26, 8  ;;  %v3074_v26 = vld [vmem:[%s3915_s1 + $0x38] sm:$0xff] }
 0x12e   :  { %165 = vxpose.xlu1.b32.cont [5/8] (short) (narrow) %v140_v28, 8  ;;  %v40_v28 = vld [vmem:[%s3915_s1 + $0x8] sm:$0xff] }
 0x132   :  { %166 = vxpose.xlu1.b32.cont [6/8] (short) (narrow) %v144_v31, 8 }
 0x136   :  { %167 = vxpose.xlu1.b32.cont [7/8] (short) (narrow) %v150_v33, 8 }
 0x13a   :  { %168 = vxpose.xlu1.b32.end [8/8] (short) (narrow) %v154_v36, 8 }
 0x15a   :  { %v196_v37 = vpop.permute.xlu0 %195 }
 0x15c   :  { %v453_v42 = vpop.permute.xlu1 %452 }
 0x15f   :  { %v449_v38 = vpop.permute.xlu0 %448 }
 0x162   :  { %v206_v43 = vpop.permute.xlu1 %205 }
 0x164   :  { %v201_v39 = vpop.permute.xlu0 %200 }
 0x167   :  { %v3024_v45 = vpop.permute.xlu1 %456 }
 0x168   :  { %v3017_v40 = vpop.permute.xlu0 %611 }
 0x169   :  { %2489 = vmatprep.subr.bf16.mxu1 %v3017_v40 }
 0x16c   :  { %v3020_v41 = vpop.permute.xlu0 %460  ;;  %v3028_v47 = vpop.permute.xlu1 %210 }
 0x170   :  { %v3032_v50 = vpop.permute.xlu1 %220 }
 0x171   :  { %v3022_v44 = vpop.permute.xlu0 %215 }
 0x174   :  { %v3034_v53 = vpop.permute.xlu1 %230 }
 0x176   :  { %v3026_v46 = vpop.permute.xlu0 %464 }
 0x17a   :  { %v3030_v48 = vpop.permute.xlu0 %468 }
 0x17f   :  { %v226_v51 = vpop.permute.xlu0 %225 }
 0x184   :  { %v473_v54 = vpop.permute.xlu0 %472 }
 0x188   :  { %v477_v60 = vpop.permute.xlu0 %476 }
 0x19e   :  { %v177_v57 = vpop.trf.xlu1 }
 0x19f   :  { %v3041_v58 = vrot.slane %v177_v57, %v3036_v55  ;;  %v3044_v59 = vrot.slane %v177_v57, %v3038_v56 }
 0x1a1   :  { %v243_v61 = vadd.f32 %v3041_v58, %v226_v51  ;;  %v237_v62 = vadd.f32 %v3041_v58, %v196_v37  ;;  %v489_v63 = vadd.f32 %v3044_v59, %v473_v54  ;;  %v483_v0 = vadd.f32 %v3044_v59, %v449_v38 }
 0x1a2   :  { %v490_v4 = vadd.f32 %v3044_v59, %v477_v60  ;;  %v238_v5 = vadd.f32 %v3041_v58, %v201_v39  ;;  %v484_v6 = vadd.f32 %v3044_v59, %v453_v42  ;;  %v239_v31 = vadd.f32 %v3041_v58, %v206_v43 }
 0x1a3   :  { %vm251_vm2 = vcmp.gt.f32.partialorder %v243_v61, 0.0  ;;  %v259_v7 = vmul.f32 0.2, %v243_v61  ;;  %vm245_vm3 = vcmp.gt.f32.partialorder %v237_v62, 0.0  ;;  %v253_v8 = vmul.f32 0.2, %v237_v62 }
 0x1a4   :  { %vm497_vm4 = vcmp.gt.f32.partialorder %v489_v63, 0.0  ;;  %v505_v9 = vmul.f32 0.2, %v489_v63  ;;  %vm491_vm5 = vcmp.gt.f32.partialorder %v483_v0, 0.0  ;;  %v499_v10 = vmul.f32 0.2, %v483_v0 }
 0x1a5   :  { %v267_v11 = vsel %vm251_vm2, %v243_v61, %v259_v7  ;;  %v261_v12 = vsel %vm245_vm3, %v237_v62, %v253_v8  ;;  %vm498_vm6 = vcmp.gt.f32.partialorder %v490_v4, 0.0  ;;  %v506_v13 = vmul.f32 0.2, %v490_v4 }
 0x1a6   :  { %v3059_v14 = vadd.f32 %v267_v11, %v45_v2  ;;  %v3061_v17 = vadd.f32 %v261_v12, %v39_v3  ;;  %v513_v18 = vsel %vm497_vm4, %v489_v63, %v505_v9  ;;  %v507_v19 = vsel %vm491_vm5, %v483_v0, %v499_v10 }
 0x1a7   :  { %v3063_v20 = vadd.f32 %v513_v18, %v45_v2  ;;  %vm246_vm7 = vcmp.gt.f32.partialorder %v238_v5, 0.0  ;;  %v3069_v23 = vadd.f32 %v507_v19, %v39_v3  ;;  %v254_v24 = vmul.f32 0.2, %v238_v5 }
 0x1a8   :  { %v296_v21 = vsel %vm277_vm1, %v3059_v14, -inf  ;;  %v278_v22 = vsel %vm277_vm1, %v3061_v17, -inf  ;;  %v514_v27 = vsel %vm498_vm6, %v490_v4, %v506_v13  ;;  %v500_v29 = vmul.f32 0.2, %v484_v6 }
 0x1a9   :  { %297 = vmax.xlane.f32.xlu1 %v296_v21  ;;  %279 = vmax.xlane.f32.xlu0 %v278_v22  ;;  %v262_v32 = vsel %vm246_vm7, %v238_v5, %v254_v24  ;;  %vm492_vm8 = vcmp.gt.f32.partialorder %v484_v6, 0.0  ;;  %v541_v33 = vsel %vm277_vm1, %v3063_v20, -inf  ;;  %v523_v34 = vsel %vm277_vm1, %v3069_v23, -inf }
 0x1aa   :  { %v3085_v36 = vadd.f32 %v514_v27, %v3074_v26  ;;  %v3087_v37 = vadd.f32 %v262_v32, %v40_v28  ;;  %v508_v38 = vsel %vm492_vm8, %v484_v6, %v500_v29  ;;  %v255_v39 = vmul.f32 0.2, %v239_v31 }
 0x1ab   :  { %v485_v42 = vadd.f32 %v3044_v59, %v3024_v45  ;;  %vm247_vm9 = vcmp.gt.f32.partialorder %v239_v31, 0.0  ;;  %v3095_v51 = vadd.f32 %v508_v38, %v40_v28  ;;  %v240_v45 = vadd.f32 %v3041_v58, %v3028_v47  ;;  %v42_v47 = vld [vmem:[%s3915_s1 + $0x18] sm:$0xff] }
 0x1ac   :  { %v544_v43 = vsel %vm277_vm1, %v3085_v36, -inf  ;;  %v281_v49 = vsel %vm277_vm1, %v3087_v37, -inf  ;;  %v263_v54 = vsel %vm247_vm9, %v239_v31, %v255_v39  ;;  %v486_v0 = vadd.f32 %v3044_v59, %v3020_v41 }
 0x1ad   :  { %542 = vmax.xlane.f32.xlu1 %v541_v33  ;;  %524 = vmax.xlane.f32.xlu0 %v523_v34  ;;  %v501_v57 = vmul.f32 0.2, %v485_v42  ;;  %vm493_vm10 = vcmp.gt.f32.partialorder %v485_v42, 0.0  ;;  %v526_v60 = vsel %vm277_vm1, %v3095_v51, -inf  ;;  %v3107_v61 = vadd.f32 %v263_v54, %v3100_v52 }
 0x1ae   :  { %v256_v63 = vmul.f32 0.2, %v240_v45  ;;  %vm248_vm11 = vcmp.gt.f32.partialorder %v240_v45, 0.0  ;;  %v502_v5 = vmul.f32 0.2, %v486_v0  ;;  %v241_v6 = vadd.f32 %v3041_v58, %v3022_v44  ;;  %v43_v44 = vld [vmem:[%s3915_s1 + $0x20] sm:$0xff] }
 0x1af   :  { %v509_v62 = vsel %vm493_vm10, %v485_v42, %v501_v57  ;;  %v284_v2 = vsel %vm277_vm1, %v3107_v61, -inf  ;;  %vm494_vm12 = vcmp.gt.f32.partialorder %v486_v0, 0.0  ;;  %v487_v10 = vadd.f32 %v3044_v59, %v3026_v46 }
 0x1b0   :  { %v3114_v3 = vadd.f32 %v509_v62, %v3100_v52  ;;  %v264_v4 = vsel %vm248_vm11, %v240_v45, %v256_v63  ;;  %v510_v8 = vsel %vm494_vm12, %v486_v0, %v502_v5  ;;  %v257_v9 = vmul.f32 0.2, %v241_v6 }
 0x1b1   :  { %545 = vmax.xlane.f32.xlu1 %v544_v43  ;;  %282 = vmax.xlane.f32.xlu0 %v281_v49  ;;  %v3123_v7 = vadd.f32 %v264_v4, %v42_v47  ;;  %vm249_vm13 = vcmp.gt.f32.partialorder %v241_v6, 0.0  ;;  %v3129_v12 = vadd.f32 %v510_v8, %v42_v47  ;;  %v503_v18 = vmul.f32 0.2, %v487_v10 }
 0x1b2   :  { %v529_v41 = vsel %vm277_vm1, %v3114_v3, -inf  ;;  %v265_v13 = vsel %vm249_vm13, %v241_v6, %v257_v9  ;;  %v242_v19 = vadd.f32 %v3041_v58, %v3032_v50  ;;  %vm495_vm14 = vcmp.gt.f32.partialorder %v487_v10, 0.0 }
 0x1b3   :  { %v287_v11 = vsel %vm277_vm1, %v3123_v7, -inf  ;;  %v532_v46 = vsel %vm277_vm1, %v3129_v12, -inf  ;;  %v3140_v21 = vadd.f32 %v265_v13, %v43_v44  ;;  %v511_v22 = vsel %vm495_vm14, %v487_v10, %v503_v18 }
 0x1b4   :  { %v258_v24 = vmul.f32 0.2, %v242_v19  ;;  %v488_v27 = vadd.f32 %v3044_v59, %v3030_v48  ;;  %vm250_vm15 = vcmp.gt.f32.partialorder %v242_v19, 0.0  ;;  %v3146_v50 = vadd.f32 %v511_v22, %v43_v44 }
 0x1b5   :  { %527 = vmax.xlane.f32.xlu0 %v526_v60  ;;  %v290_v28 = vsel %vm277_vm1, %v3140_v21, -inf  ;;  %v244_v32 = vadd.f32 %v3041_v58, %v3034_v53 }
 0x1b6   :  { %v266_v29 = vsel %vm250_vm15, %v242_v19, %v258_v24  ;;  %v504_v31 = vmul.f32 0.2, %v488_v27  ;;  %vm496_vm0 = vcmp.gt.f32.partialorder %v488_v27, 0.0  ;;  %v535_v48 = vsel %vm277_vm1, %v3146_v50, -inf }
 0x1b7   :  { %v260_v34 = vmul.f32 0.2, %v244_v32  ;;  %vm252_vm2 = vcmp.gt.f32.partialorder %v244_v32, 0.0 }
 0x1b8   :  { %v512_v33 = vsel %vm496_vm0, %v488_v27, %v504_v31 }
 0x1b9   :  { %285 = vmax.xlane.f32.xlu0 %v284_v2  ;;  %v268_v42 = vsel %vm252_vm2, %v244_v32, %v260_v34 }
 0x1ba   :  { %v3164_v58 = vadd.f32 %v268_v42, %v3074_v26 }
 0x1bc   :  { %v299_v43 = vsel %vm277_vm1, %v3164_v58, -inf }
 0x1bd   :  { %530 = vmax.xlane.f32.xlu0 %v529_v41 }
 0x1c1   :  { %288 = vmax.xlane.f32.xlu0 %v287_v11 }
 0x1c2   :  { %613 = vrot.lane.b32.xlu1 %v2996_v25, %s2888_s0  ;;  %v44_v25 = vld [vmem:[%s3915_s1 + $0x28] sm:$0xff] }
 0x1c3   :  { %v3155_v59 = vadd.f32 %v266_v29, %v44_v25  ;;  %v3159_v39 = vadd.f32 %v512_v33, %v44_v25 }
 0x1c5   :  { %533 = vmax.xlane.f32.xlu0 %v532_v46  ;;  %v293_v38 = vsel %vm277_vm1, %v3155_v59, -inf  ;;  %v538_v53 = vsel %vm277_vm1, %v3159_v39, -inf }
 0x1c9   :  { %291 = vmax.xlane.f32.xlu0 %v290_v28 }
 0x1cd   :  { %536 = vmax.xlane.f32.xlu0 %v535_v48 }
 0x1d1   :  { %294 = vmax.xlane.f32.xlu0 %v293_v38 }
 0x1d5   :  { %539 = vmax.xlane.f32.xlu0 %v538_v53 }
 0x1d9   :  { %300 = vmax.xlane.f32.xlu0 %v299_v43 }
 0x1ef   :  { %615 = vrot.lane.b32.xlu0 %v3004_v30, %s2888_s0 }
 0x1f3   :  { %617 = vrot.lane.b32.xlu0 %v3010_v35, %s2888_s0 }
 0x236   :  { %v280_v49 = vpop.xlane.xlu0 %279  ;;  %v298_v10 = vpop.xlane.xlu1 %297 }
 0x237   :  { %v302_v57 = vsub.f32 %v3061_v17, %v280_v49 }
 0x239   :  { %v310_v62 = vmul.f32 1.442695, %v302_v57 }
 0x23a   :  { %v525_v54 = vpop.xlane.xlu0 %524  ;;  %v543_v46 = vpop.xlane.xlu1 %542 }
 0x23b   :  { %v547_v45 = vsub.f32 %v3069_v23, %v525_v54  ;;  %v553_v27 = vsub.f32 %v3063_v20, %v543_v46  ;;  %v308_v54 = vsub.f32 %v3059_v14, %v298_v10 }
 0x23d   :  { %v555_v60 = vmul.f32 1.442695, %v547_v45  ;;  %v567_v33 = vmul.f32 1.442695, %v553_v27  ;;  %v2650_v27 = vld [vmem:[%s3916_s5 + $0x14] ss:$8 sps:$4 sm:$0xff]  }
 0x23e   :  { %v283_v26 = vpop.xlane.xlu0 %282  ;;  %v546_v31 = vpop.xlane.xlu1 %545 }
 0x23f   :  { %v303_v63 = vsub.f32 %v3087_v37, %v283_v26  ;;  %2677 = vpow2.f32 %v555_v60 }
 0x240   :  { %2679 = vpow2.f32 %v310_v62 }
 0x241   :  { %v312_v0 = vmul.f32 1.442695, %v303_v63 }
 0x242   :  { %v528_v2 = vpop.xlane.xlu0 %527  ;;  %v614_v43 = vpop.permute.xlu1 %613 }
 0x243   :  { %v548_v30 = vsub.f32 %v3095_v51, %v528_v2  ;;  %2681 = vpow2.f32 %v312_v0 }
 0x245   :  { %v557_v47 = vmul.f32 1.442695, %v548_v30 }
 0x246   :  { %v286_v35 = vpop.xlane.xlu0 %285 }
 0x247   :  { %2683 = vpow2.f32 %v557_v47  ;;  %v304_v17 = vsub.f32 %v3107_v61, %v286_v35 }
 0x249   :  { %v3176_v4 = vpop.eup %2677  ;;  %v314_v51 = vmul.f32 1.442695, %v304_v17 }
 0x24a   :  { %v531_v23 = vpop.xlane.xlu0 %530  ;;  %v571_v37 = vsel %vm277_vm1, %v3176_v4, 0.0  ;;  %v3182_v6 = vpop.eup %2679 }
 0x24b   :  { %v549_v5 = vsub.f32 %v3114_v3, %v531_v23  ;;  %572 = vadd.xlane.f32.xlu0 %v571_v37 }
 0x24d   :  { %v559_v41 = vmul.f32 1.442695, %v549_v5  ;;  %v3184_v8 = vpop.eup %2681  ;;  %v326_v5 = vsel %vm277_vm1, %v3182_v6, 0.0 }
 0x24e   :  { %v289_v9 = vpop.xlane.xlu0 %288  ;;  %v358_v61 = vpack.c.bf16 %v3184_v8, %v3182_v6 }
 0x24f   :  { %2685 = vpow2.f32 %v559_v41  ;;  %v305_v11 = vsub.f32 %v3123_v7, %v289_v9 }
 0x250   :  { %2481 = vmatprep.mubr.msk.bf16.mxu1 %vm277_vm1, %v358_v61  ;;  %2687 = vpow2.f32 %v314_v51 }
 0x251   :  { %v3189_v44 = vpop.eup %2683  ;;  %v316_v3 = vmul.f32 1.442695, %v305_v11 }
 0x252   :  { %v534_v13 = vpop.xlane.xlu0 %533  ;;  %v574_v18 = vsel %vm277_vm1, %v3189_v44, 0.0 }
 0x253   :  { %2689 = vpow2.f32 %v316_v3  ;;  %v550_v19 = vsub.f32 %v3129_v12, %v534_v13  ;;  %575 = vadd.xlane.f32.xlu1 %v574_v18  ;;  %v603_v3 = vpack.c.bf16 %v3189_v44, %v3176_v4  ;;  %v329_v13 = vsel %vm277_vm1, %v3184_v8, 0.0 }
 0x255   :  { %v561_v22 = vmul.f32 1.442695, %v550_v19 }
 0x256   :  { %v292_v7 = vpop.xlane.xlu0 %291 }
 0x257   :  { %2691 = vpow2.f32 %v561_v22  ;;  %v306_v28 = vsub.f32 %v3140_v21, %v292_v7  ;;  %v2645_v7 = vld [vmem:[%s3916_s5] ss:$8 sps:$4 sm:$0xff]  }
 0x259   :  { %v3195_v24 = vpop.eup %2685  ;;  %v318_v38 = vmul.f32 1.442695, %v306_v28  ;;  %v2648_v28 = vld [vmem:[%s3916_s5 + $0x10] ss:$8 sps:$4 sm:$0xff]  }
 0x25a   :  { %v537_v25 = vpop.xlane.xlu0 %536  ;;  %v577_v29 = vsel %vm277_vm1, %v3195_v24, 0.0  ;;  %v2688_v12 = vpop.eup %2687 }
 0x25b   :  { %v551_v32 = vsub.f32 %v3146_v50, %v537_v25  ;;  %578 = vadd.xlane.f32.xlu0 %v577_v29  ;;  %v554_v50 = vsub.f32 %v3085_v36, %v546_v31  ;;  %v322_v36 = vmul.f32 1.442695, %v308_v54  ;;  %v332_v10 = vsel %vm277_vm1, %v2688_v12, 0.0  ;;  %v2653_v25 = vld [vmem:[%s3916_s5 + $0x24] ss:$8 sps:$4 sm:$0xff]  }
 0x25c   :  { %v2651_v29 = vld [vmem:[%s3916_s5 + $0x20] ss:$8 sps:$4 sm:$0xff]   ;;  %v2656_v31 = vld [vmem:[%s3916_s5 + $0x34] ss:$8 sps:$4 sm:$0xff]  }
 0x25d   :  { %v3202_v48 = vpop.eup %2689  ;;  %v563_v34 = vmul.f32 1.442695, %v551_v32  ;;  %v569_v60 = vmul.f32 1.442695, %v554_v50  ;;  %v2654_v32 = vld [vmem:[%s3916_s5 + $0x30] ss:$8 sps:$4 sm:$0xff]  }
 0x25e   :  { %v295_v42 = vpop.xlane.xlu0 %294  ;;  %v359_v53 = vpack.c.bf16 %v3202_v48, %v2688_v12  ;;  %v335_v46 = vsel %vm277_vm1, %v3202_v48, 0.0  ;;  %v2659_v12 = vld [vmem:[%s3916_s5 + $0x44] ss:$8 sps:$4 sm:$0xff]   ;;  %v2657_v48 = vld [vmem:[%s3916_s5 + $0x40] ss:$8 sps:$4 sm:$0xff]  }
 0x25f   :  { %2693 = vpow2.f32 %v563_v34  ;;  %v307_v20 = vsub.f32 %v3155_v59, %v295_v42  ;;  %v2660_v34 = vld [vmem:[%s3916_s5 + $0x50] ss:$8 sps:$4 sm:$0xff]  }
 0x260   :  { %2482 = vmatmul.mubr.msk.bf16.vlgmr.msra.gmra.mrb[0].mxu1 %vm277_vm1, %v359_v53  ;;  %2695 = vpow2.f32 %v567_v33  ;;  %v2662_v33 = vld [vmem:[%s3916_s5 + $0x54] ss:$8 sps:$4 sm:$0xff]  }
 0x261   :  { %v3207_v21 = vpop.eup %2691  ;;  %v320_v49 = vmul.f32 1.442695, %v307_v20  ;;  %2490 = vmatpush3.bf16.msra.mxu1 %v3017_v40  ;;  %2697 = vpow2.f32 %v318_v38 }
 0x262   :  { %2491 = vmatprep.subr.bf16.mxu1 %v614_v43  ;;  %v540_v57 = vpop.xlane.xlu0 %539  ;;  %v580_v45 = vsel %vm277_vm1, %v3207_v21, 0.0  ;;  %v604_v18 = vpack.c.bf16 %v3207_v21, %v3195_v24  ;;  %v2647_v24 = vld [vmem:[%s3916_s5 + $0x4] ss:$8 sps:$4 sm:$0xff]  }
 0x263   :  { %2699 = vpow2.f32 %v320_v49  ;;  %v552_v59 = vsub.f32 %v3159_v39, %v540_v57  ;;  %581 = vadd.xlane.f32.xlu0 %v580_v45  ;;  %886 = vmatprep.subr.bf16.mxu0 %v2647_v24 }
 0x264   :  { %887 = vmatpush1.bf16.msra.mxu0 %v2645_v7 }
 0x265   :  { %v565_v26 = vmul.f32 1.442695, %v552_v59  ;;  %2492 = vmatpush3.bf16.msra.mxu1 %v614_v43  ;;  %888 = vmatprep.subr.bf16.mxu0 %v2650_v27 }
 0x266   :  { %v301_v62 = vpop.xlane.xlu0 %300 }
 0x267   :  { %2701 = vpow2.f32 %v565_v26  ;;  %v309_v40 = vsub.f32 %v3164_v58, %v301_v62  ;;  %v2663_v62 = vld [vmem:[%s3916_s5 + $0x60] ss:$8 sps:$4 sm:$0xff]  }
 0x268   :  { %2703 = vpow2.f32 %v569_v60  ;;  %889 = vmatpush1.bf16.msra.mxu0 %v2648_v28 }
 0x269   :  { %v2694_v63 = vpop.eup %2693  ;;  %v324_v14 = vmul.f32 1.442695, %v309_v40  ;;  %2705 = vpow2.f32 %v322_v36  ;;  %890 = vmatprep.subr.bf16.mxu0 %v2653_v25  ;;  %v2665_v40 = vld [vmem:[%s3916_s5 + $0x64] ss:$8 sps:$4 sm:$0xff]  }
 0x26a   :  { %v616_v0 = vpop.permute.xlu0 %615  ;;  %v583_v2 = vsel %vm277_vm1, %v2694_v63, 0.0  ;;  %v2696_v30 = vpop.eup %2695 }
 0x26b   :  { %2707 = vpow2.f32 %v324_v14  ;;  %584 = vadd.xlane.f32.xlu0 %v583_v2  ;;  %2493 = vmatprep.subr.bf16.mxu1 %v616_v0  ;;  %v2698_v39 = vpop.eup %2697  ;;  %v589_v17 = vsel %vm277_vm1, %v2696_v30, 0.0 }
 0x26c   :  { %2494 = vmatpush3.bf16.msra.mxu1 %v616_v0  ;;  %v338_v6 = vsel %vm277_vm1, %v2698_v39, 0.0  ;;  %891 = vmatpush1.bf16.msra.mxu0 %v2651_v29 }
 0x26d   :  { %v2700_v47 = vpop.eup %2699  ;;  %892 = vmatprep.subr.bf16.mxu0 %v2656_v31 }
 0x26e   :  { %v618_v35 = vpop.permute.xlu0 %617  ;;  %v360_v23 = vpack.c.bf16 %v2700_v47, %v2698_v39  ;;  %v341_v44 = vsel %vm277_vm1, %v2700_v47, 0.0  ;;  %v2668_v47 = vld [vmem:[%s3916_s5 + $0x74] ss:$8 sps:$4 sm:$0xff]  }
 0x26f   :  { %590 = vadd.xlane.f32.xlu0 %v589_v17  ;;  %2495 = vmatprep.subr.bf16.mxu1 %v618_v35 }
 0x270   :  { %2485 = vmatprep.mubr.msk.bf16.mxu1 %vm277_vm1, %v360_v23  ;;  %2496 = vmatpush3.bf16.msra.mxu1 %v618_v35  ;;  %v2666_v23 = vld [vmem:[%s3916_s5 + $0x70] ss:$8 sps:$4 sm:$0xff]  }
 0x271   :  { %v2702_v58 = vpop.eup %2701  ;;  %893 = vmatpush1.bf16.msra.mxu0 %v2654_v32 }
 0x272   :  { %v586_v37 = vsel %vm277_vm1, %v2702_v58, 0.0  ;;  %v2704_v41 = vpop.eup %2703  ;;  %v605_v4 = vpack.c.bf16 %v2702_v58, %v2694_v63  ;;  %894 = vmatprep.subr.bf16.mxu0 %v2659_v12  ;;  %v2367_v12 = vld [vmem:[%s3917_s3] ss:$0 sm:$0xff] }
 0x273   :  { %327 = vadd.xlane.f32.xlu0 %v326_v5  ;;  %587 = vadd.xlane.f32.xlu1 %v586_v37  ;;  %v2706_v51 = vpop.eup %2705  ;;  %v592_v11 = vsel %vm277_vm1, %v2704_v41, 0.0  ;;  %v606_v22 = vpack.c.bf16 %v2704_v41, %v2696_v30 }
 0x274   :  { %v344_v19 = vsel %vm277_vm1, %v2706_v51, 0.0 }
 0x275   :  { %v2708_v9 = vpop.eup %2707  ;;  %895 = vmatpush1.bf16.msra.mxu0 %v2657_v48 }
 0x276   :  { %v361_v61 = vpack.c.bf16 %v2708_v9, %v2706_v51  ;;  %v347_v8 = vsel %vm277_vm1, %v2708_v9, 0.0  ;;  %896 = vmatprep.subr.bf16.mxu0 %v2662_v33 }
 0x277   :  { %333 = vadd.xlane.f32.xlu0 %v332_v10  ;;  %593 = vadd.xlane.f32.xlu1 %v592_v11 }
 0x278   :  { %2486 = vmatmul.mubr.msk.bf16.gmra.mrb[4].mxu1 %vm277_vm1, %v361_v61 }
 0x279   :  { %2497 = vmatprep.mubr.msk.bf16.mxu1 %vm277_vm1, %v603_v3  ;;  %897 = vmatpush1.bf16.msra.mxu0 %v2660_v34 }
 0x27a   :  { %898 = vmatprep.subr.bf16.mxu0 %v2665_v40 }
 0x27b   :  { %339 = vadd.xlane.f32.xlu0 %v338_v6  ;;  %330 = vadd.xlane.f32.xlu1 %v329_v13 }
 0x27d   :  { %899 = vmatpush1.bf16.msra.mxu0 %v2663_v62 }
 0x27e   :  { %900 = vmatprep.subr.bf16.mxu0 %v2668_v47 }
 0x27f   :  { %345 = vadd.xlane.f32.xlu0 %v344_v19  ;;  %336 = vadd.xlane.f32.xlu1 %v335_v46 }
 0x280   :  { %2498 = vmatmul.mubr.msk.bf16.vlgmr.msra.gmra.mrb[8].mxu1 %vm277_vm1, %v604_v18 }
 0x281   :  { %2501 = vmatprep.mubr.msk.bf16.mxu1 %vm277_vm1, %v605_v4  ;;  %901 = vmatpush1.bf16.msra.mxu0 %v2666_v23 }
 0x283   :  { %342 = vadd.xlane.f32.xlu1 %v341_v44 }
 0x287   :  { %348 = vadd.xlane.f32.xlu1 %v347_v8 }
 0x288   :  { %2502 = vmatmul.mubr.msk.bf16.gmra.mrb[12].mxu1 %vm277_vm1, %v606_v22 }
 0x2d8   :  { %v573_v21 = vpop.xlane.xlu0 %572 }
 0x2d9   :  { %2709 = vrcp.f32 %v573_v21  ;;  %v2368_v21 = vld [vmem:[%s3918_s4] ss:$0 sm:$0xff] }
 0x2e0   :  { %v576_v43 = vpop.xlane.xlu1 %575 }
 0x2e1   :  { %2711 = vrcp.f32 %v576_v43 }
 0x2e3   :  { %v2710_v63 = vpop.eup %2709 }
 0x2e8   :  { %v579_v50 = vpop.xlane.xlu0 %578 }
 0x2eb   :  { %v2712_v35 = vpop.eup %2711 }
 0x2f0   :  { %v582_v49 = vpop.xlane.xlu0 %581 }
 0x2f1   :  { %2713 = vrcp.f32 %v582_v49 }
 0x2f2   :  { %2715 = vrcp.f32 %v579_v50 }
 0x2f8   :  { %v585_v59 = vpop.xlane.xlu0 %584 }
 0x2f9   :  { %2717 = vrcp.f32 %v585_v59 }
 0x2fb   :  { %v2714_v5 = vpop.eup %2713 }
 0x2fc   :  { %v591_v14 = vpop.xlane.xlu0 %590  ;;  %v2716_v41 = vpop.eup %2715 }
 0x300   :  { %v588_v26 = vpop.xlane.xlu1 %587  ;;  %v328_v8 = vpop.xlane.xlu0 %327 }
 0x301   :  { %2719 = vrcp.f32 %v588_v26 }
 0x302   :  { %2721 = vrcp.f32 %v591_v14 }
 0x303   :  { %v2718_v11 = vpop.eup %2717 }
 0x304   :  { %v594_v2 = vpop.xlane.xlu1 %593  ;;  %v334_v7 = vpop.xlane.xlu0 %333 }
 0x305   :  { %2723 = vrcp.f32 %v594_v2 }
 0x306   :  { %2725 = vrcp.f32 %v328_v8 }
 0x308   :  { %v331_v22 = vpop.xlane.xlu1 %330  ;;  %v340_v27 = vpop.xlane.xlu0 %339 }
 0x309   :  { %2727 = vrcp.f32 %v331_v22 }
 0x30b   :  { %v2720_v3 = vpop.eup %2719 }
 0x30c   :  { %v2722_v19 = vpop.eup %2721  ;;  %v337_v24 = vpop.xlane.xlu1 %336 }
 0x30d   :  { %2729 = vrcp.f32 %v337_v24  ;;  %v346_v25 = vpop.xlane.xlu0 %345 }
 0x30e   :  { %2731 = vrcp.f32 %v334_v7 }
 0x30f   :  { %v2724_v46 = vpop.eup %2723  ;;  %2733 = vrcp.f32 %v340_v27 }
 0x310   :  { %v343_v28 = vpop.xlane.xlu1 %342  ;;  %v2726_v29 = vpop.eup %2725 }
 0x311   :  { %2735 = vrcp.f32 %v343_v28 }
 0x312   :  { %2737 = vrcp.f32 %v346_v25 }
 0x313   :  { %v2728_v48 = vpop.eup %2727 }
 0x314   :  { %v349_v31 = vpop.xlane.xlu1 %348 }
 0x315   :  { %2739 = vrcp.f32 %v349_v31 }
 0x317   :  { %v2730_v43 = vpop.eup %2729 }
 0x333   :  { %v3277_v38 = vpop.f32.mrb[0].mxu1 }
 0x334   :  { %v3279_v42 = vpop.f32.mrb[1].mxu1 }
 0x335   :  { %v3281_v53 = vpop.f32.mrb[2].mxu1  ;;  %v439_v32 = vmul.f32 %v2726_v29, %v3279_v42 }
 0x336   :  { %v3283_v20 = vpop.f32.mrb[3].mxu1  ;;  %v442_v42 = vmul.f32 %v2730_v43, %v3281_v53 }
 0x337   :  { %v440_v34 = vmul.f32 %v2728_v48, %v3283_v20 }
 0x34b   :  { %v3285_v54 = vpop.f32.mrb[4].mxu1 }
 0x34c   :  { %v3287_v57 = vpop.f32.mrb[5].mxu1 }
 0x34d   :  { %v3289_v45 = vpop.f32.mrb[6].mxu1 }
 0x34e   :  { %v3291_v60 = vpop.f32.mrb[7].mxu1 }
 0x353   :  { %v2499_v36 = vpop.f32.mrb[8].mxu1 }
 0x354   :  { %v669_v0 = vpop.f32.mrb[9].mxu1  ;;  %v702_v51 = vmul.f32 %v2716_v41, %v2499_v36  ;;  %v2732_v36 = vpop.eup %2731 }
 0x355   :  { %v700_v30 = vmul.f32 %v2710_v63, %v669_v0  ;;  %v2500_v39 = vpop.f32.mrb[10].mxu1  ;;  %v441_v20 = vmul.f32 %v2732_v36, %v3277_v38 }
 0x356   :  { %v672_v17 = vpop.f32.mrb[11].mxu1  ;;  %v703_v37 = vmul.f32 %v2714_v5, %v2500_v39  ;;  %v2734_v39 = vpop.eup %2733 }
 0x357   :  { %v701_v58 = vmul.f32 %v2712_v35, %v672_v17  ;;  %716 = vrot.lane.b32.xlu0 %v700_v30, %s2888_s0  ;;  %v2736_v35 = vpop.eup %2735  ;;  %v443_v5 = vmul.f32 %v2734_v39, %v3287_v57 }
 0x359   :  { %718 = vrot.lane.b32.xlu1 %v701_v58, %s2888_s0 }
 0x35b   :  { %v2503_v9 = vpop.f32.mrb[12].mxu1  ;;  %722 = vrot.lane.b32.xlu0 %v703_v37, %s2888_s0  ;;  %v444_v37 = vmul.f32 %v2736_v35, %v3291_v60 }
 0x35c   :  { %v685_v10 = vpop.f32.mrb[13].mxu1  ;;  %v706_v4 = vmul.f32 %v2722_v19, %v2503_v9 }
 0x35d   :  { %v2504_v61 = vpop.f32.mrb[14].mxu1  ;;  %720 = vrot.lane.b32.xlu1 %v702_v51, %s2888_s0  ;;  %v704_v13 = vmul.f32 %v2718_v11, %v685_v10  ;;  %v2738_v10 = vpop.eup %2737 }
 0x35e   :  { %v688_v6 = vpop.f32.mrb[15].mxu1  ;;  %v707_v44 = vmul.f32 %v2724_v46, %v2504_v61  ;;  %v445_v46 = vmul.f32 %v2738_v10, %v3285_v54 }
 0x35f   :  { %v705_v18 = vmul.f32 %v2720_v3, %v688_v6  ;;  %v2740_v3 = vpop.eup %2739 }
 0x360   :  { %v446_v57 = vmul.f32 %v2740_v3, %v3289_v45 }
 0x361   :  { %726 = vrot.lane.b32.xlu0 %v705_v18, %s2888_s0  ;;  %724 = vrot.lane.b32.xlu1 %v704_v13, %s2888_s0 }
 0x365   :  { %730 = vrot.lane.b32.xlu0 %v707_v44, %s2888_s0  ;;  %728 = vrot.lane.b32.xlu1 %v706_v4, %s2888_s0 }
 0x3c9   :  { %v717_v33 = vpop.permute.xlu0 %716 }
 0x3ca   :  { %v740_v50 = vsel %vm277_vm1, %v439_v32, %v717_v33 }
 0x3cb   :  { %v755_v49 = vmul.f32 %v2367_v12, %v740_v50  ;;  %v719_v59 = vpop.permute.xlu1 %718 }
 0x3cc   :  { %v741_v26 = vsel %vm277_vm1, %v440_v34, %v719_v59 }
 0x3cd   :  { %v770_v62 = vadd.f32 %v2368_v21, %v755_v49  ;;  %v756_v40 = vmul.f32 %v2367_v12, %v741_v26  ;;  %v723_v63 = vpop.permute.xlu0 %722 }
 0x3ce   :  { %v743_v14 = vsel %vm277_vm1, %v442_v42, %v723_v63 }
 0x3cf   :  { %v771_v0 = vadd.f32 %v2368_v21, %v756_v40  ;;  %v758_v2 = vmul.f32 %v2367_v12, %v743_v14  ;;  %v721_v30 = vpop.permute.xlu1 %720  ;;  %v778_v17 = vmax.f32 %v770_v62, 0.0 }
 0x3d0   :  { %v742_v47 = vsel %vm277_vm1, %v441_v20, %v721_v30 }
 0x3d1   :  { %v779_v23 = vmax.f32 %v771_v0, 0.0  ;;  %v773_v53 = vadd.f32 %v2368_v21, %v758_v2  ;;  %v757_v58 = vmul.f32 %v2367_v12, %v742_v47 }
 0x3d3   :  { %v786_v41 = vpack.c.bf16 %v779_v23, %v778_v17  ;;  %v772_v51 = vadd.f32 %v2368_v21, %v757_v58  ;;  %v725_v38 = vpop.permute.xlu1 %724  ;;  %v727_v9 = vpop.permute.xlu0 %726  ;;  %v781_v6 = vmax.f32 %v773_v53, 0.0 }
 0x3d4   :  { %v744_v11 = vsel %vm277_vm1, %v443_v5, %v725_v38  ;;  %v745_v61 = vsel %vm277_vm1, %v444_v37, %v727_v9 }
 0x3d5   :  { %v780_v13 = vmax.f32 %v772_v51, 0.0  ;;  %v759_v18 = vmul.f32 %v2367_v12, %v744_v11  ;;  %v760_v19 = vmul.f32 %v2367_v12, %v745_v61  ;;  %919 = vmatmul.mubr.bf16.vlgmr.msra.gmra.mrb[16].mxu0 %v786_v41 }
 0x3d6   :  { %928 = vmatprep.mubr.bf16.mxu0 %v2885_v1 }
 0x3d7   :  { %v774_v60 = vadd.f32 %v2368_v21, %v759_v18  ;;  %v775_v4 = vadd.f32 %v2368_v21, %v760_v19  ;;  %v729_v44 = vpop.permute.xlu1 %728  ;;  %v731_v8 = vpop.permute.xlu0 %730  ;;  %v787_v22 = vpack.c.bf16 %v781_v6, %v780_v13 }
 0x3d8   :  { %v746_v7 = vsel %vm277_vm1, %v445_v46, %v729_v44  ;;  %v747_v24 = vsel %vm277_vm1, %v446_v57, %v731_v8 }
 0x3d9   :  { %v782_v27 = vmax.f32 %v774_v60, 0.0  ;;  %v783_v28 = vmax.f32 %v775_v4, 0.0  ;;  %v761_v25 = vmul.f32 %v2367_v12, %v746_v7  ;;  %v762_v29 = vmul.f32 %v2367_v12, %v747_v24 }
 0x3db   :  { %v776_v31 = vadd.f32 %v2368_v21, %v761_v25  ;;  %v777_v32 = vadd.f32 %v2368_v21, %v762_v29  ;;  %v788_v54 = vpack.c.bf16 %v783_v28, %v782_v27  ;;  %v2869_v25 = vld [vmem:[%s3915_s1] sm:$0xff] }
 0x3dd   :  { %v784_v48 = vmax.f32 %v776_v31, 0.0  ;;  %v785_v45 = vmax.f32 %v777_v32, 0.0  ;;  %929 = vmatmul.mubr.bf16.gmra.mrb[20].mxu0 %v787_v22 }
 0x3de   :  { %938 = vmatprep.mubr.bf16.mxu0 %v2885_v1 }
 0x3df   :  { %v789_v33 = vpack.c.bf16 %v785_v45, %v784_v48 }
 0x3e5   :  { %939 = vmatmul.mubr.bf16.gmra.mrb[24].mxu0 %v788_v54 }
 0x3e6   :  { %948 = vmatprep.mubr.bf16.mxu0 %v2885_v1 }
 0x3ed   :  { %949 = vmatmul.mubr.bf16.gmra.mrb[28].mxu0 %v789_v33 }
 0x4a8   :  { %v920_v34 = vpop.f32.mrb[16].mxu0 }
 0x4a9   :  { %v922_v50 = vpop.f32.mrb[17].mxu0 }
 0x4aa   :  { %1249 = vperm.xlu0 %2613, %v922_v50   ;;  %997 = vperm.xlu1 %2608, %v922_v50   ;;  %v924_v43 = vpop.f32.mrb[18].mxu0 }
 0x4ab   :  { %v959_v49 = vpack.c.bf16 %v924_v43, %v920_v34  ;;  %v926_v12 = vpop.f32.mrb[19].mxu0 }
 0x4ad   :  { %2505 = vmatprep.subr.bf16.mxu1 %v959_v49 }
 0x4ae   :  { %2614 = vset.pattern.permute.xlu0 %v2886_v15  ;;  %2615 = vset.pattern.permute.xlu1 %v2887_v16 }
 0x4af   :  { %2506 = vmatpush3.bf16.msra.mxu1 %v959_v49  ;;  %1253 = vperm.xlu1 %2615, %v926_v12  }
 0x4b0   :  { %1002 = vperm.xlu0 %2614, %v926_v12   ;;  %v930_v21 = vpop.f32.mrb[20].mxu0 }
 0x4b1   :  { %v932_v59 = vpop.f32.mrb[21].mxu0 }
 0x4b2   :  { %v934_v42 = vpop.f32.mrb[22].mxu0 }
 0x4b3   :  { %v3340_v1 = vpack.c.bf16 %v934_v42, %v930_v21  ;;  %2616 = vset.pattern.permute.xlu1 %v2886_v15  ;;  %v936_v26 = vpop.f32.mrb[23].mxu0 }
 0x4b4   :  { %2619 = vset.pattern.permute.xlu0 %v2887_v16  ;;  %1007 = vperm.xlu1 %2616, %v932_v59  }
 0x4b5   :  { %1261 = vperm.xlu0 %2619, %v936_v26   ;;  %2507 = vmatprep.subr.bf16.mxu1 %v3340_v1 }
 0x4b6   :  { %2508 = vmatpush3.bf16.msra.mxu1 %v3340_v1 }
 0x4b8   :  { %2617 = vset.pattern.permute.xlu1 %v2887_v16  ;;  %v940_v36 = vpop.f32.mrb[24].mxu0 }
 0x4b9   :  { %1257 = vperm.xlu1 %2617, %v932_v59   ;;  %2620 = vset.pattern.permute.xlu0 %v2886_v15  ;;  %v942_v62 = vpop.f32.mrb[25].mxu0 }
 0x4ba   :  { %1017 = vperm.xlu0 %2620, %v942_v62   ;;  %v944_v40 = vpop.f32.mrb[26].mxu0 }
 0x4bb   :  { %v3348_v63 = vpack.c.bf16 %v944_v40, %v940_v36  ;;  %v946_v20 = vpop.f32.mrb[27].mxu0 }
 0x4bd   :  { %2618 = vset.pattern.permute.xlu1 %v2886_v15  ;;  %2509 = vmatprep.subr.bf16.mxu1 %v3348_v63 }
 0x4be   :  { %1012 = vperm.xlu1 %2618, %v936_v26   ;;  %2623 = vset.pattern.permute.xlu0 %v2887_v16 }
 0x4bf   :  { %2510 = vmatpush3.bf16.msra.mxu1 %v3348_v63  ;;  %1269 = vperm.xlu0 %2623, %v946_v20  }
 0x4c0   :  { %v950_v14 = vpop.f32.mrb[28].mxu0 }
 0x4c1   :  { %v952_v0 = vpop.f32.mrb[29].mxu0 }
 0x4c2   :  { %2621 = vset.pattern.permute.xlu1 %v2887_v16  ;;  %v954_v2 = vpop.f32.mrb[30].mxu0 }
 0x4c3   :  { %v3355_v30 = vpack.c.bf16 %v954_v2, %v950_v14  ;;  %1265 = vperm.xlu1 %2621, %v942_v62   ;;  %2624 = vset.pattern.permute.xlu0 %v2886_v15  ;;  %v956_v39 = vpop.f32.mrb[31].mxu0 }
 0x4c4   :  { %1027 = vperm.xlu0 %2624, %v952_v0  }
 0x4c5   :  { %2511 = vmatprep.subr.bf16.mxu1 %v3355_v30 }
 0x4c6   :  { %2512 = vmatpush3.bf16.msra.mxu1 %v3355_v30 }
 0x4c7   :  { %2622 = vset.pattern.permute.xlu1 %v2886_v15 }
 0x4c8   :  { %1022 = vperm.xlu1 %2622, %v946_v20   ;;  %2627 = vset.pattern.permute.xlu0 %v2887_v16 }
 0x4c9   :  { %1277 = vperm.xlu0 %2627, %v956_v39  }
 0x4cc   :  { %2625 = vset.pattern.permute.xlu1 %v2887_v16 }
 0x4cd   :  { %1273 = vperm.xlu1 %2625, %v952_v0   ;;  %1412 = vrot.lane.b32.xlu0 %v959_v49, %s2888_s0 }
 0x4d1   :  { %2626 = vset.pattern.permute.xlu1 %v2886_v15 }
 0x4d2   :  { %1032 = vperm.xlu1 %2626, %v956_v39  }
 0x4fb   :  { %963 = vxpose.xlu1.b32.start [1/8] (short) (narrow) %v922_v50, 8  ;;  %v2870_v50 = vld [vmem:[%s3915_s1 + $0x8] sm:$0xff] }
 0x4ff   :  { %964 = vxpose.xlu1.b32.cont [2/8] (short) (narrow) %v926_v12, 8 }
 0x503   :  { %965 = vxpose.xlu1.b32.cont [3/8] (short) (narrow) %v932_v59, 8 }
 0x507   :  { %966 = vxpose.xlu1.b32.cont [4/8] (short) (narrow) %v936_v26, 8 }
 0x50b   :  { %967 = vxpose.xlu1.b32.cont [5/8] (short) (narrow) %v942_v62, 8 }
 0x50f   :  { %968 = vxpose.xlu1.b32.cont [6/8] (short) (narrow) %v946_v20, 8  ;;  %v2871_v20 = vld [vmem:[%s3915_s1 + $0x10] sm:$0xff] }
 0x513   :  { %969 = vxpose.xlu1.b32.cont [7/8] (short) (narrow) %v952_v0, 8 }
 0x517   :  { %970 = vxpose.xlu1.b32.end [8/8] (short) (narrow) %v956_v39, 8 }
 0x529   :  { %v1250_v47 = vpop.permute.xlu0 %1249  ;;  %v998_v15 = vpop.permute.xlu1 %997 }
 0x52e   :  { %v1254_v37 = vpop.permute.xlu1 %1253 }
 0x52f   :  { %v1003_v35 = vpop.permute.xlu0 %1002 }
 0x533   :  { %v1008_v41 = vpop.permute.xlu1 %1007 }
 0x534   :  { %v3365_v17 = vpop.permute.xlu0 %1261 }
 0x538   :  { %v1258_v51 = vpop.permute.xlu1 %1257 }
 0x539   :  { %v3367_v23 = vpop.permute.xlu0 %1017 }
 0x53d   :  { %v1013_v38 = vpop.permute.xlu1 %1012 }
 0x53e   :  { %v3369_v16 = vpop.permute.xlu0 %1269 }
 0x542   :  { %v3378_v9 = vpop.permute.xlu1 %1265 }
 0x543   :  { %v3371_v53 = vpop.permute.xlu0 %1027 }
 0x547   :  { %v1023_v10 = vpop.permute.xlu1 %1022 }
 0x548   :  { %v3373_v58 = vpop.permute.xlu0 %1277 }
 0x54c   :  { %v3375_v5 = vpop.permute.xlu0 %1412  ;;  %v1274_v11 = vpop.permute.xlu1 %1273 }
 0x54d   :  { %2521 = vmatprep.subr.bf16.mxu1 %v3375_v5 }
 0x551   :  { %v1033_v61 = vpop.permute.xlu1 %1032 }
 0x57b   :  { %v979_v3 = vpop.trf.xlu1 }
 0x57c   :  { %v3381_v6 = vrot.slane %v979_v3, %v3036_v55  ;;  %v3384_v13 = vrot.slane %v979_v3, %v3038_v56 }
 0x57e   :  { %v1286_v18 = vadd.f32 %v3384_v13, %v1258_v51  ;;  %v1039_v19 = vadd.f32 %v3381_v6, %v998_v15  ;;  %v1284_v46 = vadd.f32 %v3384_v13, %v1250_v47  ;;  %v1040_v57 = vadd.f32 %v3381_v6, %v1003_v35 }
 0x57f   :  { %v1042_v60 = vadd.f32 %v3381_v6, %v1013_v38  ;;  %v1285_v27 = vadd.f32 %v3384_v13, %v1254_v37  ;;  %v1041_v33 = vadd.f32 %v3381_v6, %v1008_v41  ;;  %v1044_v49 = vadd.f32 %v3381_v6, %v1023_v10  ;;  %v2872_v37 = vld [vmem:[%s3915_s1 + $0x18] sm:$0xff] }
 0x580   :  { %vm1294_vm3 = vcmp.gt.f32.partialorder %v1286_v18, 0.0  ;;  %v1302_v4 = vmul.f32 0.2, %v1286_v18  ;;  %vm1047_vm4 = vcmp.gt.f32.partialorder %v1039_v19, 0.0  ;;  %v1055_v44 = vmul.f32 0.2, %v1039_v19 }
 0x581   :  { %vm1292_vm5 = vcmp.gt.f32.partialorder %v1284_v46, 0.0  ;;  %v1300_v8 = vmul.f32 0.2, %v1284_v46  ;;  %v1056_v24 = vmul.f32 0.2, %v1040_v57  ;;  %vm1048_vm6 = vcmp.gt.f32.partialorder %v1040_v57, 0.0 }
 0x582   :  { %v1310_v22 = vsel %vm1294_vm3, %v1286_v18, %v1302_v4  ;;  %v1063_v7 = vsel %vm1047_vm4, %v1039_v19, %v1055_v44  ;;  %v1301_v45 = vmul.f32 0.2, %v1285_v27  ;;  %vm1293_vm7 = vcmp.gt.f32.partialorder %v1285_v27, 0.0 }
 0x583   :  { %v3393_v28 = vadd.f32 %v1310_v22, %v3100_v52  ;;  %v3398_v29 = vadd.f32 %v2869_v25, %v1063_v7  ;;  %v1308_v31 = vsel %vm1292_vm5, %v1284_v46, %v1300_v8  ;;  %v1064_v52 = vsel %vm1048_vm6, %v1040_v57, %v1056_v24 }
 0x584   :  { %v3404_v48 = vadd.f32 %v2869_v25, %v1308_v31  ;;  %v3412_v43 = vadd.f32 %v2870_v50, %v1064_v52  ;;  %v1309_v12 = vsel %vm1293_vm7, %v1285_v27, %v1301_v45  ;;  %v1057_v21 = vmul.f32 0.2, %v1041_v33 }
 0x585   :  { %v1330_v32 = vsel %vm277_vm1, %v3393_v28, -inf  ;;  %v1079_v54 = vsel %vm277_vm1, %v3398_v29, -inf  ;;  %vm1049_vm8 = vcmp.gt.f32.partialorder %v1041_v33, 0.0  ;;  %v3417_v42 = vadd.f32 %v2870_v50, %v1309_v12 }
 0x586   :  { %1331 = vmax.xlane.f32.xlu1 %v1330_v32  ;;  %1080 = vmax.xlane.f32.xlu0 %v1079_v54  ;;  %v1324_v34 = vsel %vm277_vm1, %v3404_v48, -inf  ;;  %v1082_v59 = vsel %vm277_vm1, %v3412_v43, -inf  ;;  %v1065_v26 = vsel %vm1049_vm8, %v1041_v33, %v1057_v21  ;;  %v1290_v36 = vadd.f32 %v3384_v13, %v1274_v11  ;;  %v2875_v32 = vld [vmem:[%s3915_s1 + $0x30] sm:$0xff] }
 0x587   :  { %v3421_v62 = vadd.f32 %v3381_v6, %v1033_v61  ;;  %v1327_v40 = vsel %vm277_vm1, %v3417_v42, -inf  ;;  %v3428_v14 = vadd.f32 %v2871_v20, %v1065_v26  ;;  %v1058_v2 = vmul.f32 0.2, %v1042_v60  ;;  %v3456_v61 = vld [vmem:[%s3915_s1 + $0x20] sm:$0xff] }
 0x588   :  { %v1287_v39 = vadd.f32 %v3384_v13, %v3365_v17  ;;  %vm1050_vm9 = vcmp.gt.f32.partialorder %v1042_v60, 0.0  ;;  %v1043_v15 = vadd.f32 %v3381_v6, %v3367_v23  ;;  %v1060_v18 = vmul.f32 0.2, %v1044_v49 }
 0x589   :  { %v1085_v0 = vsel %vm277_vm1, %v3428_v14, -inf  ;;  %v1066_v47 = vsel %vm1050_vm9, %v1042_v60, %v1058_v2  ;;  %v1289_v19 = vadd.f32 %v3384_v13, %v3369_v16  ;;  %vm1052_vm13 = vcmp.gt.f32.partialorder %v1044_v49, 0.0  ;;  %v2874_v16 = vld [vmem:[%s3915_s1 + $0x28] sm:$0xff] }
 0x58a   :  { %1325 = vmax.xlane.f32.xlu0 %v1324_v34  ;;  %v1303_v35 = vmul.f32 0.2, %v1287_v39  ;;  %vm1295_vm10 = vcmp.gt.f32.partialorder %v1287_v39, 0.0  ;;  %v3443_v41 = vadd.f32 %v2872_v37, %v1066_v47  ;;  %v1059_v51 = vmul.f32 0.2, %v1043_v15 }
 0x58b   :  { %vm1051_vm11 = vcmp.gt.f32.partialorder %v1043_v15, 0.0  ;;  %v1068_v60 = vsel %vm1052_vm13, %v1044_v49, %v1060_v18  ;;  %v1305_v4 = vmul.f32 0.2, %v1289_v19  ;;  %v1045_v44 = vadd.f32 %v3381_v6, %v3371_v53 }
 0x58c   :  { %v1088_v17 = vsel %vm277_vm1, %v3443_v41, -inf  ;;  %v1067_v23 = vsel %vm1051_vm11, %v1043_v15, %v1059_v51  ;;  %vm1297_vm14 = vcmp.gt.f32.partialorder %v1289_v19, 0.0  ;;  %v3475_v22 = vadd.f32 %v2874_v16, %v1068_v60 }
 0x58d   :  { %v1313_v7 = vsel %vm1297_vm14, %v1289_v19, %v1305_v4  ;;  %v1061_v24 = vmul.f32 0.2, %v1045_v44  ;;  %vm1053_vm15 = vcmp.gt.f32.partialorder %v1045_v44, 0.0  ;;  %v1306_v6 = vmul.f32 0.2, %v1290_v36 }
 0x58e   :  { %1083 = vmax.xlane.f32.xlu0 %v1082_v59  ;;  %v1094_v27 = vsel %vm277_vm1, %v3475_v22, -inf  ;;  %v3479_v25 = vadd.f32 %v2874_v16, %v1313_v7  ;;  %vm1298_vm0 = vcmp.gt.f32.partialorder %v1290_v36, 0.0  ;;  %v1062_v45 = vmul.f32 0.2, %v3421_v62  ;;  %v2876_v59 = vld [vmem:[%s3915_s1 + $0x38] sm:$0xff] }
 0x58f   :  { %v1069_v53 = vsel %vm1053_vm15, %v1045_v44, %v1061_v24  ;;  %v1314_v52 = vsel %vm1298_vm0, %v1290_v36, %v1306_v6  ;;  %v1291_v33 = vadd.f32 %v3384_v13, %v3373_v58  ;;  %vm1054_vm2 = vcmp.gt.f32.partialorder %v3421_v62, 0.0 }
 0x590   :  { %v1339_v31 = vsel %vm277_vm1, %v3479_v25, -inf  ;;  %v3486_v54 = vadd.f32 %v2875_v32, %v1069_v53  ;;  %v3494_v50 = vadd.f32 %v2875_v32, %v1314_v52  ;;  %v1070_v49 = vsel %vm1054_vm2, %v3421_v62, %v1062_v45 }
 0x591   :  { %v1307_v12 = vmul.f32 0.2, %v1291_v33  ;;  %vm1299_vm3 = vcmp.gt.f32.partialorder %v1291_v33, 0.0  ;;  %v3502_v58 = vadd.f32 %v2876_v59, %v1070_v49 }
 0x592   :  { %1328 = vmax.xlane.f32.xlu0 %v1327_v40  ;;  %v1097_v34 = vsel %vm277_vm1, %v3486_v54, -inf  ;;  %v1342_v21 = vsel %vm277_vm1, %v3494_v50, -inf }
 0x593   :  { %v1100_v26 = vsel %vm277_vm1, %v3502_v58, -inf }
 0x596   :  { %1086 = vmax.xlane.f32.xlu0 %v1085_v0 }
 0x597   :  { %1414 = vrot.lane.b32.xlu1 %v3340_v1, %s2888_s0  ;;  %v1311_v1 = vsel %vm1295_vm10, %v1287_v39, %v1303_v35 }
 0x598   :  { %v3449_v38 = vadd.f32 %v2872_v37, %v1311_v1 }
 0x59a   :  { %v1333_v11 = vsel %vm277_vm1, %v3449_v38, -inf }
 0x5ac   :  { %1416 = vrot.lane.b32.xlu0 %v3348_v63, %s2888_s0  ;;  %v1288_v63 = vadd.f32 %v3384_v13, %v3378_v9  ;;  %v3459_v9 = vadd.f32 %v3456_v61, %v1067_v23  ;;  %v1315_v13 = vsel %vm1299_vm3, %v1291_v33, %v1307_v12 }
 0x5ad   :  { %v3506_v36 = vadd.f32 %v2876_v59, %v1315_v13 }
 0x5ae   :  { %v1304_v10 = vmul.f32 0.2, %v1288_v63  ;;  %vm1296_vm12 = vcmp.gt.f32.partialorder %v1288_v63, 0.0  ;;  %v1091_v46 = vsel %vm277_vm1, %v3459_v9, -inf }
 0x5af   :  { %v1345_v62 = vsel %vm277_vm1, %v3506_v36, -inf }
 0x5b0   :  { %v1312_v3 = vsel %vm1296_vm12, %v1288_v63, %v1304_v10 }
 0x5b1   :  { %v3466_v57 = vadd.f32 %v3456_v61, %v1312_v3 }
 0x5b3   :  { %v1336_v8 = vsel %vm277_vm1, %v3466_v57, -inf }
 0x5cb   :  { %1089 = vmax.xlane.f32.xlu0 %v1088_v17 }
 0x5cf   :  { %1334 = vmax.xlane.f32.xlu0 %v1333_v11 }
 0x5d3   :  { %1092 = vmax.xlane.f32.xlu0 %v1091_v46 }
 0x5d7   :  { %1337 = vmax.xlane.f32.xlu0 %v1336_v8 }
 0x5db   :  { %1095 = vmax.xlane.f32.xlu0 %v1094_v27 }
 0x5df   :  { %1340 = vmax.xlane.f32.xlu0 %v1339_v31 }
 0x5e3   :  { %1098 = vmax.xlane.f32.xlu0 %v1097_v34 }
 0x5e7   :  { %1343 = vmax.xlane.f32.xlu0 %v1342_v21 }
 0x5eb   :  { %1101 = vmax.xlane.f32.xlu0 %v1100_v26 }
 0x5ef   :  { %1346 = vmax.xlane.f32.xlu0 %v1345_v62 }
 0x605   :  { %1418 = vrot.lane.b32.xlu0 %v3355_v30, %s2888_s0 }
 0x613   :  { %v1332_v40 = vpop.xlane.xlu1 %1331  ;;  %v1081_v20 = vpop.xlane.xlu0 %1080 }
 0x614   :  { %v1350_v0 = vsub.f32 %v3393_v28, %v1332_v40  ;;  %v1103_v2 = vsub.f32 %v3398_v29, %v1081_v20 }
 0x616   :  { %v1360_v35 = vmul.f32 1.442695, %v1350_v0  ;;  %v1111_v37 = vmul.f32 1.442695, %v1103_v2 }
 0x617   :  { %v1326_v39 = vpop.xlane.xlu0 %1325 }
 0x618   :  { %v1348_v47 = vsub.f32 %v3404_v48, %v1326_v39 }
 0x61a   :  { %v1356_v15 = vmul.f32 1.442695, %v1348_v47 }
 0x61b   :  { %v1084_v1 = vpop.xlane.xlu0 %1083 }
 0x61c   :  { %2741 = vpow2.f32 %v1356_v15  ;;  %v1104_v51 = vsub.f32 %v3412_v43, %v1084_v1 }
 0x61d   :  { %2743 = vpow2.f32 %v1360_v35 }
 0x61e   :  { %v1113_v63 = vmul.f32 1.442695, %v1104_v51  ;;  %2745 = vpow2.f32 %v1111_v37 }
 0x61f   :  { %v1329_v30 = vpop.xlane.xlu0 %1328 }
 0x620   :  { %2747 = vpow2.f32 %v1113_v63  ;;  %v1349_v17 = vsub.f32 %v3417_v42, %v1329_v30 }
 0x622   :  { %v1358_v28 = vmul.f32 1.442695, %v1349_v17 }
 0x623   :  { %v1087_v46 = vpop.xlane.xlu0 %1086 }
 0x624   :  { %2749 = vpow2.f32 %v1358_v28  ;;  %v1105_v60 = vsub.f32 %v3428_v14, %v1087_v46 }
 0x626   :  { %v3517_v29 = vpop.eup %2741  ;;  %v1115_v44 = vmul.f32 1.442695, %v1105_v60 }
 0x627   :  { %v1372_v48 = vsel %vm277_vm1, %v3517_v29, 0.0  ;;  %v3521_v23 = vpop.eup %2743  ;;  %v1417_v4 = vpop.permute.xlu0 %1416 }
 0x628   :  { %1373 = vadd.xlane.f32.xlu0 %v1372_v48  ;;  %v3523_v10 = vpop.eup %2745  ;;  %v1378_v11 = vsel %vm277_vm1, %v3521_v23, 0.0  ;;  %2751 = vpow2.f32 %v1115_v44 }
 0x62a   :  { %v3525_v43 = vpop.eup %2747 }
 0x62b   :  { %v1159_v42 = vpack.c.bf16 %v3525_v43, %v3523_v10  ;;  %v1130_v44 = vsel %vm277_vm1, %v3525_v43, 0.0 }
 0x62c   :  { %1379 = vadd.xlane.f32.xlu0 %v1378_v11 }
 0x62d   :  { %2513 = vmatprep.mubr.msk.bf16.mxu1 %vm277_vm1, %v1159_v42  ;;  %v1127_v42 = vsel %vm277_vm1, %v3523_v10, 0.0 }
 0x62e   :  { %v3532_v3 = vpop.eup %2749 }
 0x62f   :  { %v1375_v18 = vsel %vm277_vm1, %v3532_v3, 0.0  ;;  %v1404_v19 = vpack.c.bf16 %v3532_v3, %v3517_v29 }
 0x630   :  { %1376 = vadd.xlane.f32.xlu1 %v1375_v18 }
 0x632   :  { %v3543_v14 = vpop.eup %2751 }
 0x633   :  { %v1133_v46 = vsel %vm277_vm1, %v3543_v14, 0.0 }
 0x658   :  { %v1090_v8 = vpop.xlane.xlu0 %1089 }
 0x659   :  { %v1106_v16 = vsub.f32 %v3443_v41, %v1090_v8 }
 0x65b   :  { %v1117_v7 = vmul.f32 1.442695, %v1106_v16  ;;  %v2669_v16 = vld [vmem:[%s3919_s8] sm:$0xff]  }
 0x65c   :  { %v1335_v24 = vpop.xlane.xlu0 %1334  ;;  %2537 = vmatprep.subr.bf16.mxu0 %v2669_v16 }
 0x65d   :  { %2753 = vpow2.f32 %v1117_v7  ;;  %v1351_v27 = vsub.f32 %v3449_v38, %v1335_v24  ;;  %v2670_v7 = vld [vmem:[%s3919_s8 + $0x8] sm:$0xff]   ;;  %2538 = vmatpush3.bf16.msra.mxu0 %v2669_v16  ;;  %v2671_v24 = vld [vmem:[%s3919_s8 + $0x10] sm:$0xff]  }
 0x65e   :  { %2539 = vmatprep.subr.bf16.mxu0 %v2670_v7 }
 0x65f   :  { %v1362_v53 = vmul.f32 1.442695, %v1351_v27  ;;  %v2672_v27 = vld [vmem:[%s3919_s8 + $0x18] sm:$0xff]  }
 0x660   :  { %v1093_v6 = vpop.xlane.xlu0 %1092 }
 0x661   :  { %2755 = vpow2.f32 %v1362_v53  ;;  %v1107_v31 = vsub.f32 %v3459_v9, %v1093_v6  ;;  %v1415_v9 = vpop.permute.xlu1 %1414  ;;  %2540 = vmatpush3.bf16.msra.mxu0 %v2670_v7  ;;  %v2673_v53 = vld [vmem:[%s3919_s8 + $0x20] sm:$0xff]  }
 0x662   :  { %2541 = vmatprep.subr.bf16.mxu0 %v2671_v24 }
 0x663   :  { %v1119_v34 = vmul.f32 1.442695, %v1107_v31 }
 0x664   :  { %v1338_v32 = vpop.xlane.xlu0 %1337 }
 0x665   :  { %v1352_v52 = vsub.f32 %v3466_v57, %v1338_v32  ;;  %2542 = vmatpush3.bf16.msra.mxu0 %v2671_v24  ;;  %v2394_v24 = vld [vmem:[%s3921_s7] ss:$0 sm:$0xff]  ;;  %s2892_s7 = smov 120  }
 0x666   :  { %2543 = vmatprep.subr.bf16.mxu0 %v2672_v27 }
 0x667   :  { %v3545_v45 = vpop.eup %2753  ;;  %v1364_v33 = vmul.f32 1.442695, %v1352_v52 }
 0x668   :  { %v1160_v41 = vpack.c.bf16 %v3545_v45, %v3543_v14  ;;  %v1096_v49 = vpop.xlane.xlu0 %1095 }
 0x669   :  { %2757 = vpow2.f32 %v1364_v33  ;;  %v1108_v38 = vsub.f32 %v3475_v22, %v1096_v49  ;;  %2544 = vmatpush3.bf16.msra.mxu0 %v2672_v27 }
 0x66a   :  { %2514 = vmatmul.mubr.msk.bf16.vlgmr.msra.gmra.mrb[16].mxu1 %vm277_vm1, %v1160_v41  ;;  %2759 = vpow2.f32 %v1119_v34  ;;  %2545 = vmatprep.subr.bf16.mxu0 %v2673_v53 }
 0x66b   :  { %v3551_v12 = vpop.eup %2755  ;;  %v1121_v21 = vmul.f32 1.442695, %v1108_v38  ;;  %2522 = vmatpush3.bf16.msra.mxu1 %v3375_v5 }
 0x66c   :  { %2523 = vmatprep.subr.bf16.mxu1 %v1415_v9  ;;  %v1341_v57 = vpop.xlane.xlu0 %1340  ;;  %v1381_v59 = vsel %vm277_vm1, %v3551_v12, 0.0  ;;  %v1405_v10 = vpack.c.bf16 %v3551_v12, %v3521_v23 }
 0x66d   :  { %2761 = vpow2.f32 %v1121_v21  ;;  %v1353_v13 = vsub.f32 %v3479_v25, %v1341_v57  ;;  %1382 = vadd.xlane.f32.xlu0 %v1381_v59  ;;  %2546 = vmatpush3.bf16.msra.mxu0 %v2673_v53  ;;  %v2674_v57 = vld [vmem:[%s3919_s8 + $0x28] sm:$0xff]  }
 0x66e   :  { %2547 = vmatprep.subr.bf16.mxu0 %v2674_v57 }
 0x66f   :  { %v1366_v26 = vmul.f32 1.442695, %v1353_v13  ;;  %2524 = vmatpush3.bf16.msra.mxu1 %v1415_v9 }
 0x670   :  { %2525 = vmatprep.subr.bf16.mxu1 %v1417_v4  ;;  %v1099_v22 = vpop.xlane.xlu0 %1098 }
 0x671   :  { %2763 = vpow2.f32 %v1366_v26  ;;  %v1109_v40 = vsub.f32 %v3486_v54, %v1099_v22  ;;  %2548 = vmatpush3.bf16.msra.mxu0 %v2674_v57 }
 0x673   :  { %v2758_v62 = vpop.eup %2757  ;;  %2526 = vmatpush3.bf16.msra.mxu1 %v1417_v4  ;;  %v1123_v25 = vmul.f32 1.442695, %v1109_v40 }
 0x674   :  { %v1344_v5 = vpop.xlane.xlu0 %1343  ;;  %v1384_v20 = vsel %vm277_vm1, %v2758_v62, 0.0  ;;  %v2760_v2 = vpop.eup %2759 }
 0x675   :  { %v1354_v0 = vsub.f32 %v3494_v50, %v1344_v5  ;;  %1385 = vadd.xlane.f32.xlu0 %v1384_v20  ;;  %v1139_v4 = vsel %vm277_vm1, %v2760_v2, 0.0 }
 0x677   :  { %v2762_v39 = vpop.eup %2761  ;;  %v1368_v47 = vmul.f32 1.442695, %v1354_v0 }
 0x678   :  { %v1102_v35 = vpop.xlane.xlu0 %1101  ;;  %v1161_v15 = vpack.c.bf16 %v2762_v39, %v2760_v2  ;;  %v1142_v23 = vsel %vm277_vm1, %v2762_v39, 0.0  ;;  %v2675_v39 = vld [vmem:[%s3919_s8 + $0x30] sm:$0xff]  }
 0x679   :  { %2765 = vpow2.f32 %v1368_v47  ;;  %v1110_v37 = vsub.f32 %v3502_v58, %v1102_v35  ;;  %2549 = vmatprep.subr.bf16.mxu0 %v2675_v39  ;;  %v2676_v35 = vld [vmem:[%s3919_s8 + $0x38] sm:$0xff]  }
 0x67a   :  { %2517 = vmatprep.mubr.msk.bf16.mxu1 %vm277_vm1, %v1161_v15  ;;  %2767 = vpow2.f32 %v1123_v25  ;;  %2550 = vmatpush3.bf16.msra.mxu0 %v2675_v39 }
 0x67b   :  { %v2764_v1 = vpop.eup %2763  ;;  %v1125_v51 = vmul.f32 1.442695, %v1110_v37  ;;  %2551 = vmatprep.subr.bf16.mxu0 %v2676_v35 }
 0x67c   :  { %v1347_v54 = vpop.xlane.xlu0 %1346  ;;  %v1387_v63 = vsel %vm277_vm1, %v2764_v1, 0.0  ;;  %v1406_v29 = vpack.c.bf16 %v2764_v1, %v2758_v62 }
 0x67d   :  { %2769 = vpow2.f32 %v1125_v51  ;;  %v1355_v50 = vsub.f32 %v3506_v36, %v1347_v54  ;;  %1388 = vadd.xlane.f32.xlu1 %v1387_v63 }
 0x67e   :  { %2552 = vmatpush3.bf16.msra.mxu0 %v2676_v35 }
 0x67f   :  { %v1370_v30 = vmul.f32 1.442695, %v1355_v50 }
 0x680   :  { %v1419_v17 = vpop.permute.xlu0 %1418 }
 0x681   :  { %2771 = vpow2.f32 %v1370_v30  ;;  %2527 = vmatprep.subr.bf16.mxu1 %v1419_v17 }
 0x682   :  { %2528 = vmatpush3.bf16.msra.mxu1 %v1419_v17 }
 0x683   :  { %v2766_v28 = vpop.eup %2765 }
 0x684   :  { %v1390_v58 = vsel %vm277_vm1, %v2766_v28, 0.0  ;;  %v2768_v48 = vpop.eup %2767 }
 0x685   :  { %1391 = vadd.xlane.f32.xlu0 %v1390_v58  ;;  %v1145_v3 = vsel %vm277_vm1, %v2768_v48, 0.0 }
 0x687   :  { %v2770_v11 = vpop.eup %2769 }
 0x688   :  { %v1162_v18 = vpack.c.bf16 %v2770_v11, %v2768_v48  ;;  %v1148_v43 = vsel %vm277_vm1, %v2770_v11, 0.0  ;;  %v2889_v11 = vmov 18  }
 0x689   :  { %1128 = vadd.xlane.f32.xlu0 %v1127_v42  ;;  %2630 = vset.pattern.permute.xlu1 %v2889_v11 }
 0x68a   :  { %2518 = vmatmul.mubr.msk.bf16.gmra.mrb[20].mxu1 %vm277_vm1, %v1162_v18  ;;  %2628 = vset.pattern.permute.xlu0 %v2889_v11 }
 0x68b   :  { %v2772_v36 = vpop.eup %2771  ;;  %2529 = vmatprep.mubr.msk.bf16.mxu1 %vm277_vm1, %v1404_v19  ;;  %v1136_v19 = vsel %vm277_vm1, %v3545_v45, 0.0 }
 0x68c   :  { %v1393_v60 = vsel %vm277_vm1, %v2772_v36, 0.0  ;;  %v1407_v8 = vpack.c.bf16 %v2772_v36, %v2766_v28 }
 0x68d   :  { %1134 = vadd.xlane.f32.xlu0 %v1133_v46  ;;  %1394 = vadd.xlane.f32.xlu1 %v1393_v60 }
 0x691   :  { %1140 = vadd.xlane.f32.xlu0 %v1139_v4  ;;  %1131 = vadd.xlane.f32.xlu1 %v1130_v44 }
 0x692   :  { %2530 = vmatmul.mubr.msk.bf16.vlgmr.msra.gmra.mrb[24].mxu1 %vm277_vm1, %v1405_v10 }
 0x693   :  { %2533 = vmatprep.mubr.msk.bf16.mxu1 %vm277_vm1, %v1406_v29 }
 0x695   :  { %1146 = vadd.xlane.f32.xlu0 %v1145_v3  ;;  %1137 = vadd.xlane.f32.xlu1 %v1136_v19 }
 0x699   :  { %1143 = vadd.xlane.f32.xlu1 %v1142_v23 }
 0x69a   :  { %2534 = vmatmul.mubr.msk.bf16.gmra.mrb[28].mxu1 %vm277_vm1, %v1407_v8  ;;  %v2393_v8 = vld [vmem:[%s3920_s6] ss:$0 sm:$0xff]  ;;  %s2890_s6 = smov 112  }
 0x69d   :  { %1149 = vadd.xlane.f32.xlu1 %v1148_v43 }
 0x6b5   :  { %v1374_v14 = vpop.xlane.xlu0 %1373 }
 0x6b6   :  { %2773 = vrcp.f32 %v1374_v14 }
 0x6b9   :  { %v1380_v45 = vpop.xlane.xlu0 %1379 }
 0x6bd   :  { %v1377_v33 = vpop.xlane.xlu1 %1376 }
 0x6be   :  { %2775 = vrcp.f32 %v1377_v33 }
 0x6c0   :  { %v2774_v13 = vpop.eup %2773 }
 0x6c8   :  { %v2776_v20 = vpop.eup %2775 }
 0x6fa   :  { %v1383_v41 = vpop.xlane.xlu0 %1382 }
 0x6fb   :  { %2777 = vrcp.f32 %v1383_v41 }
 0x6fc   :  { %2779 = vrcp.f32 %v1380_v45 }
 0x702   :  { %v1386_v9 = vpop.xlane.xlu0 %1385 }
 0x703   :  { %2781 = vrcp.f32 %v1386_v9 }
 0x705   :  { %v2778_v47 = vpop.eup %2777 }
 0x706   :  { %v2780_v15 = vpop.eup %2779 }
 0x70a   :  { %v1389_v21 = vpop.xlane.xlu1 %1388 }
 0x70b   :  { %2783 = vrcp.f32 %v1389_v21 }
 0x70d   :  { %v2782_v54 = vpop.eup %2781 }
 0x712   :  { %v1392_v26 = vpop.xlane.xlu0 %1391 }
 0x713   :  { %2785 = vrcp.f32 %v1392_v26 }
 0x715   :  { %v2784_v50 = vpop.eup %2783 }
 0x716   :  { %v1129_v36 = vpop.xlane.xlu0 %1128 }
 0x71a   :  { %v1395_v62 = vpop.xlane.xlu1 %1394  ;;  %v1135_v60 = vpop.xlane.xlu0 %1134 }
 0x71b   :  { %2787 = vrcp.f32 %v1395_v62 }
 0x71c   :  { %2789 = vrcp.f32 %v1129_v36 }
 0x71d   :  { %v2786_v58 = vpop.eup %2785 }
 0x71e   :  { %v1132_v46 = vpop.xlane.xlu1 %1131  ;;  %v1141_v4 = vpop.xlane.xlu0 %1140 }
 0x71f   :  { %2791 = vrcp.f32 %v1132_v46 }
 0x722   :  { %v1138_v10 = vpop.xlane.xlu1 %1137  ;;  %v1147_v29 = vpop.xlane.xlu0 %1146 }
 0x723   :  { %2793 = vrcp.f32 %v1138_v10 }
 0x724   :  { %2795 = vrcp.f32 %v1135_v60 }
 0x725   :  { %v2788_v48 = vpop.eup %2787  ;;  %2797 = vrcp.f32 %v1141_v4 }
 0x726   :  { %v1144_v44 = vpop.xlane.xlu1 %1143  ;;  %v2790_v3 = vpop.eup %2789 }
 0x727   :  { %2799 = vrcp.f32 %v1144_v44 }
 0x728   :  { %2801 = vrcp.f32 %v1147_v29 }
 0x729   :  { %v2792_v43 = vpop.eup %2791 }
 0x72a   :  { %v1150_v19 = vpop.xlane.xlu1 %1149 }
 0x72b   :  { %2803 = vrcp.f32 %v1150_v19 }
 0x72d   :  { %v2794_v53 = vpop.eup %2793 }
 0x72e   :  { %v2796_v41 = vpop.eup %2795 }
 0x72f   :  { %v2798_v62 = vpop.eup %2797 }
 0x73d   :  { %v3603_v6 = vpop.f32.mrb[16].mxu1 }
 0x73e   :  { %v3605_v31 = vpop.f32.mrb[17].mxu1 }
 0x73f   :  { %v3607_v32 = vpop.f32.mrb[18].mxu1  ;;  %v1240_v23 = vmul.f32 %v2790_v3, %v3605_v31 }
 0x740   :  { %v3609_v52 = vpop.f32.mrb[19].mxu1  ;;  %v1243_v31 = vmul.f32 %v2794_v53, %v3607_v32 }
 0x741   :  { %v1241_v7 = vmul.f32 %v2792_v43, %v3609_v52  ;;  %v1242_v52 = vmul.f32 %v2796_v41, %v3603_v6 }
 0x75d   :  { %v3611_v34 = vpop.f32.mrb[20].mxu1 }
 0x75e   :  { %v3613_v49 = vpop.f32.mrb[21].mxu1 }
 0x75f   :  { %v3615_v38 = vpop.f32.mrb[22].mxu1  ;;  %v1244_v39 = vmul.f32 %v2798_v62, %v3613_v49 }
 0x760   :  { %v3617_v12 = vpop.f32.mrb[23].mxu1 }
 0x765   :  { %v2531_v59 = vpop.f32.mrb[24].mxu1 }
 0x766   :  { %v1470_v22 = vpop.f32.mrb[25].mxu1  ;;  %v1503_v37 = vmul.f32 %v2780_v15, %v2531_v59 }
 0x767   :  { %v1501_v40 = vmul.f32 %v2774_v13, %v1470_v22  ;;  %v2532_v5 = vpop.f32.mrb[26].mxu1 }
 0x768   :  { %v1473_v0 = vpop.f32.mrb[27].mxu1  ;;  %v1504_v25 = vmul.f32 %v2778_v47, %v2532_v5  ;;  %v2800_v5 = vpop.eup %2799 }
 0x769   :  { %v1502_v2 = vmul.f32 %v2776_v20, %v1473_v0  ;;  %1517 = vrot.lane.b32.xlu0 %v1501_v40, %s2888_s0  ;;  %v1245_v47 = vmul.f32 %v2800_v5, %v3617_v12 }
 0x76b   :  { %1519 = vrot.lane.b32.xlu1 %v1502_v2, %s2888_s0 }
 0x76d   :  { %v2535_v1 = vpop.f32.mrb[28].mxu1  ;;  %1523 = vrot.lane.b32.xlu0 %v1504_v25, %s2888_s0 }
 0x76e   :  { %v1486_v51 = vpop.f32.mrb[29].mxu1  ;;  %v1507_v42 = vmul.f32 %v2786_v58, %v2535_v1 }
 0x76f   :  { %v2536_v63 = vpop.f32.mrb[30].mxu1  ;;  %1521 = vrot.lane.b32.xlu1 %v1503_v37, %s2888_s0  ;;  %v1505_v17 = vmul.f32 %v2782_v54, %v1486_v51  ;;  %v2802_v37 = vpop.eup %2801 }
 0x770   :  { %v1489_v30 = vpop.f32.mrb[31].mxu1  ;;  %v1508_v18 = vmul.f32 %v2788_v48, %v2536_v63  ;;  %v2804_v54 = vpop.eup %2803 }
 0x771   :  { %v1506_v28 = vmul.f32 %v2784_v50, %v1489_v30  ;;  %v1247_v49 = vmul.f32 %v2804_v54, %v3615_v38 }
 0x773   :  { %1527 = vrot.lane.b32.xlu0 %v1506_v28, %s2888_s0  ;;  %1525 = vrot.lane.b32.xlu1 %v1505_v17, %s2888_s0  ;;  %v1246_v28 = vmul.f32 %v2802_v37, %v3611_v34 }
 0x777   :  { %1531 = vrot.lane.b32.xlu0 %v1508_v18, %s2888_s0  ;;  %1529 = vrot.lane.b32.xlu1 %v1507_v42, %s2888_s0 }
 0x7db   :  { %v1518_v16 = vpop.permute.xlu0 %1517 }
 0x7dc   :  { %v1541_v27 = vsel %vm277_vm1, %v1240_v23, %v1518_v16 }
 0x7dd   :  { %v1556_v14 = vmul.f32 %v2393_v8, %v1541_v27  ;;  %v1520_v45 = vpop.permute.xlu1 %1519 }
 0x7de   :  { %v1542_v33 = vsel %vm277_vm1, %v1241_v7, %v1520_v45 }
 0x7df   :  { %v1571_v9 = vadd.f32 %v2394_v24, %v1556_v14  ;;  %v1557_v21 = vmul.f32 %v2393_v8, %v1542_v33  ;;  %v1524_v57 = vpop.permute.xlu0 %1523  ;;  %v2891_v14 = vmov 19  }
 0x7e0   :  { %v1544_v59 = vsel %vm277_vm1, %v1243_v31, %v1524_v57 }
 0x7e1   :  { %v1572_v13 = vadd.f32 %v2394_v24, %v1557_v21  ;;  %v1559_v26 = vmul.f32 %v2393_v8, %v1544_v59  ;;  %v1522_v22 = vpop.permute.xlu1 %1521  ;;  %v1579_v20 = vmax.f32 %v1571_v9, 0.0 }
 0x7e2   :  { %v1543_v40 = vsel %vm277_vm1, %v1242_v52, %v1522_v22 }
 0x7e3   :  { %v1580_v0 = vmax.f32 %v1572_v13, 0.0  ;;  %v1574_v32 = vadd.f32 %v2394_v24, %v1559_v26  ;;  %v1558_v2 = vmul.f32 %v2393_v8, %v1543_v40 }
 0x7e5   :  { %v1573_v25 = vadd.f32 %v2394_v24, %v1558_v2  ;;  %v1526_v35 = vpop.permute.xlu1 %1525  ;;  %v1528_v6 = vpop.permute.xlu0 %1527  ;;  %v1587_v15 = vpack.c.bf16 %v1580_v0, %v1579_v20  ;;  %v1582_v63 = vmax.f32 %v1574_v32, 0.0 }
 0x7e6   :  { %v1545_v1 = vsel %vm277_vm1, %v1244_v39, %v1526_v35  ;;  %v1546_v51 = vsel %vm277_vm1, %v1245_v47, %v1528_v6 }
 0x7e7   :  { %v1581_v50 = vmax.f32 %v1573_v25, 0.0  ;;  %v1560_v30 = vmul.f32 %v2393_v8, %v1545_v1  ;;  %v1561_v17 = vmul.f32 %v2393_v8, %v1546_v51  ;;  %2553 = vmatprep.mubr.bf16.mxu0 %v1587_v15 }
 0x7e9   :  { %v1588_v12 = vpack.c.bf16 %v1582_v63, %v1581_v50  ;;  %v1575_v58 = vadd.f32 %v2394_v24, %v1560_v30  ;;  %v1576_v48 = vadd.f32 %v2394_v24, %v1561_v17  ;;  %v1530_v42 = vpop.permute.xlu1 %1529  ;;  %v1532_v18 = vpop.permute.xlu0 %1531 }
 0x7ea   :  { %v1547_v36 = vsel %vm277_vm1, %v1246_v28, %v1530_v42  ;;  %v1548_v46 = vsel %vm277_vm1, %v1247_v49, %v1532_v18 }
 0x7eb   :  { %v1583_v60 = vmax.f32 %v1575_v58, 0.0  ;;  %v1584_v10 = vmax.f32 %v1576_v48, 0.0  ;;  %v1562_v4 = vmul.f32 %v2393_v8, %v1547_v36  ;;  %v1563_v44 = vmul.f32 %v2393_v8, %v1548_v46  ;;  %2554 = vmatmul.mubr.bf16.vlgmr.msra.gmra.mrb[32].mxu0 %v1588_v12  ;;  %v2877_v46 = vld [vmem:[%s3915_s1] sm:$0xff] }
 0x7ed   :  { %v1577_v29 = vadd.f32 %v2394_v24, %v1562_v4  ;;  %v1578_v3 = vadd.f32 %v2394_v24, %v1563_v44  ;;  %v1589_v19 = vpack.c.bf16 %v1584_v10, %v1583_v60 }
 0x7ef   :  { %v1585_v34 = vmax.f32 %v1577_v29, 0.0  ;;  %v1586_v23 = vmax.f32 %v1578_v3, 0.0  ;;  %2557 = vmatprep.mubr.bf16.mxu0 %v1589_v19  ;;  %v2878_v29 = vld [vmem:[%s3915_s1 + $0x8] sm:$0xff] }
 0x7f1   :  { %v1590_v38 = vpack.c.bf16 %v1586_v23, %v1585_v34 }
 0x7f3   :  { %2558 = vmatmul.mubr.bf16.gmra.mrb[36].mxu0 %v1590_v38 }
 0x8be   :  { %v2555_v43 = vpop.f32.mrb[32].mxu0 }
 0x8bf   :  { %1797 = vperm.xlu0 %2628, %v2555_v43   ;;  %1736 = vrot.lane.b32.xlu1 %v2555_v43, %s2890_s6  ;;  %v1689_v16 = vpop.f32.mrb[33].mxu0 }
 0x8c0   :  { %v2556_v7 = vpop.f32.mrb[34].mxu0 }
 0x8c1   :  { %v1692_v27 = vpop.f32.mrb[35].mxu0  ;;  %v3661_v53 = vpack.c.bf16 %v2556_v7, %v2555_v43 }
 0x8c2   :  { %v1720_v8 = vpack.c.bf16 %v1692_v27, %v1689_v16 }
 0x8c3   :  { %2629 = vset.pattern.permute.xlu0 %v2891_v14  ;;  %1732 = vrot.lane.b32.xlu1 %v1689_v16, %s2890_s6 }
 0x8c4   :  { %2042 = vperm.xlu0 %2629, %v2555_v43   ;;  %2561 = vmatprep.subr.bf16.mxu1 %v1720_v8 }
 0x8c5   :  { %2562 = vmatpush3.bf16.msra.mxu1 %v1720_v8 }
 0x8c6   :  { %v2559_v24 = vpop.f32.mrb[36].mxu0  ;;  %2563 = vmatprep.subr.bf16.mxu1 %v3661_v53 }
 0x8c7   :  { %1789 = vperm.xlu1 %2630, %v1689_v16   ;;  %v1705_v45 = vpop.f32.mrb[37].mxu0 }
 0x8c8   :  { %1738 = vrot.lane.b32.xlu0 %v2556_v7, %s2890_s6  ;;  %v2560_v31 = vpop.f32.mrb[38].mxu0 }
 0x8c9   :  { %v1708_v33 = vpop.f32.mrb[39].mxu0  ;;  %2564 = vmatpush3.bf16.msra.mxu1 %v3661_v53  ;;  %v3667_v41 = vpack.c.bf16 %v2560_v31, %v2559_v24  ;;  %2634 = vset.pattern.permute.xlu0 %v2889_v11 }
 0x8ca   :  { %v3670_v9 = vpack.c.bf16 %v1708_v33, %v1705_v45 }
 0x8cb   :  { %2631 = vset.pattern.permute.xlu1 %v2891_v14 }
 0x8cc   :  { %2034 = vperm.xlu1 %2631, %v1689_v16   ;;  %1734 = vrot.lane.b32.xlu0 %v1692_v27, %s2890_s6 }
 0x8cd   :  { %2565 = vmatprep.subr.bf16.mxu1 %v3670_v9 }
 0x8ce   :  { %2566 = vmatpush3.bf16.msra.mxu1 %v3670_v9 }
 0x8cf   :  { %2567 = vmatprep.subr.bf16.mxu1 %v3667_v41 }
 0x8d0   :  { %2632 = vset.pattern.permute.xlu1 %v2889_v11  ;;  %1793 = vperm.xlu0 %2634, %v1692_v27  }
 0x8d1   :  { %1801 = vperm.xlu1 %2632, %v2556_v7  }
 0x8d2   :  { %2568 = vmatpush3.bf16.msra.mxu1 %v3667_v41 }
 0x8d4   :  { %2197 = vrot.lane.b32.xlu0 %v1720_v8, %s2892_s7 }
 0x8d5   :  { %2633 = vset.pattern.permute.xlu1 %v2891_v14 }
 0x8d6   :  { %2046 = vperm.xlu1 %2633, %v2556_v7  }
 0x8d8   :  { %1813 = vperm.xlu0 %2634, %v2559_v24  }
 0x8da   :  { %2038 = vperm.xlu1 %2633, %v1692_v27  }
 0x8dc   :  { %2635 = vset.pattern.permute.xlu0 %v2891_v14 }
 0x8dd   :  { %2058 = vperm.xlu0 %2635, %v2559_v24  }
 0x8de   :  { %1744 = vrot.lane.b32.xlu1 %v2559_v24, %s2890_s6 }
 0x8df   :  { %2636 = vset.pattern.permute.xlu1 %v2889_v11 }
 0x8e1   :  { %1746 = vrot.lane.b32.xlu0 %v2560_v31, %s2890_s6 }
 0x8e2   :  { %1740 = vrot.lane.b32.xlu1 %v1705_v45, %s2890_s6  ;;  %2640 = vset.pattern.permute.xlu0 %v2889_v11 }
 0x8e5   :  { %1742 = vrot.lane.b32.xlu0 %v1708_v33, %s2890_s6 }
 0x8e6   :  { %1805 = vperm.xlu1 %2636, %v1705_v45  }
 0x8e9   :  { %1809 = vperm.xlu0 %2640, %v1708_v33  }
 0x8ea   :  { %2637 = vset.pattern.permute.xlu1 %v2891_v14 }
 0x8eb   :  { %2050 = vperm.xlu1 %2637, %v1705_v45  }
 0x8ed   :  { %2641 = vset.pattern.permute.xlu0 %v2891_v14 }
 0x8ef   :  { %2638 = vset.pattern.permute.xlu1 %v2889_v11 }
 0x8f0   :  { %1817 = vperm.xlu1 %2638, %v2560_v31  }
 0x8f4   :  { %2639 = vset.pattern.permute.xlu1 %v2891_v14 }
 0x8f5   :  { %2062 = vperm.xlu1 %2639, %v2560_v31  }
 0x8f9   :  { %2054 = vperm.xlu1 %2639, %v1708_v33  }
 0x931   :  { %v1737_v21 = vpop.permute.xlu1 %1736 }
 0x935   :  { %v1733_v57 = vpop.permute.xlu1 %1732 }
 0x936   :  { %1756 = vxpose.xlu1.b32.start [1/8] (short) (narrow) %v1733_v57, 8 }
 0x93e   :  { %v1798_v52 = vpop.permute.xlu0 %1797 }
 0x943   :  { %v3686_v59 = vpop.permute.xlu0 %2042 }
 0x946   :  { %v1790_v13 = vpop.permute.xlu1 %1789 }
 0x947   :  { %v1739_v26 = vpop.permute.xlu0 %1738 }
 0x94b   :  { %v2035_v22 = vpop.permute.xlu1 %2034  ;;  %v1735_v62 = vpop.permute.xlu0 %1734 }
 0x94c   :  { %1757 = vxpose.xlu1.b32.cont [2/8] (short) (narrow) %v1735_v62, 8 }
 0x94f   :  { %v1794_v40 = vpop.permute.xlu0 %1793 }
 0x950   :  { %v1802_v5 = vpop.permute.xlu1 %1801  ;;  %1758 = vxpose.xlu1.b32.cont [3/8] (short) (narrow) %v1737_v21, 8  ;;  %v2879_v21 = vld [vmem:[%s3915_s1 + $0x10] sm:$0xff] }
 0x953   :  { %v2198_v20 = vpop.permute.xlu0 %2197 }
 0x954   :  { %1759 = vxpose.xlu1.b32.cont [4/8] (short) (narrow) %v1739_v26, 8  ;;  %2577 = vmatprep.subr.bf16.mxu0 %v2198_v20 }
 0x955   :  { %v3688_v11 = vpop.permute.xlu1 %2046  ;;  %2578 = vmatpush3.bf16.msra.mxu0 %v2198_v20 }
 0x957   :  { %v3690_v0 = vpop.permute.xlu0 %1813 }
 0x959   :  { %v2039_v32 = vpop.permute.xlu1 %2038 }
 0x95c   :  { %v3692_v2 = vpop.permute.xlu0 %2058 }
 0x95d   :  { %v1745_v39 = vpop.permute.xlu1 %1744 }
 0x960   :  { %v1747_v47 = vpop.permute.xlu0 %1746 }
 0x961   :  { %v1741_v25 = vpop.permute.xlu1 %1740 }
 0x962   :  { %1760 = vxpose.xlu1.b32.cont [5/8] (short) (narrow) %v1741_v25, 8 }
 0x964   :  { %v1743_v35 = vpop.permute.xlu0 %1742 }
 0x965   :  { %v3694_v6 = vpop.permute.xlu1 %1805 }
 0x966   :  { %1761 = vxpose.xlu1.b32.cont [6/8] (short) (narrow) %v1743_v35, 8 }
 0x96a   :  { %1762 = vxpose.xlu1.b32.cont [7/8] (short) (narrow) %v1745_v39, 8  ;;  %v2051_v15 = vpop.permute.xlu1 %2050 }
 0x96e   :  { %1763 = vxpose.xlu1.b32.end [8/8] (short) (narrow) %v1747_v47, 8 }
 0x96f   :  { %v3696_v37 = vpop.permute.xlu1 %1817 }
 0x974   :  { %v3698_v1 = vpop.permute.xlu1 %2062 }
 0x978   :  { %v2055_v51 = vpop.permute.xlu1 %2054 }
 0x9d2   :  { %v1772_v54 = vpop.trf.xlu1 }
 0x9d3   :  { %v3701_v63 = vrot.slane %v1772_v54, %v3036_v55  ;;  %v3704_v50 = vrot.slane %v1772_v54, %v3038_v56 }
 0x9d5   :  { %v2073_v30 = vadd.f32 %v3704_v50, %v2051_v15  ;;  %v1824_v17 = vadd.f32 %v3701_v63, %v1790_v13  ;;  %v1825_v28 = vadd.f32 %v3701_v63, %v1794_v40  ;;  %v2069_v49 = vadd.f32 %v3704_v50, %v2035_v22  ;;  %v2880_v22 = vld [vmem:[%s3915_s1 + $0x18] sm:$0xff] }
 0x9d6   :  { %v2070_v56 = vadd.f32 %v3704_v50, %v2039_v32  ;;  %v1826_v34 = vadd.f32 %v3701_v63, %v1798_v52  ;;  %v2074_v43 = vadd.f32 %v3704_v50, %v2055_v51  ;;  %v1827_v27 = vadd.f32 %v3701_v63, %v1802_v5 }
 0x9d7   :  { %vm2081_vm4 = vcmp.gt.f32.partialorder %v2073_v30, 0.0  ;;  %v2089_v12 = vmul.f32 0.2, %v2073_v30  ;;  %vm1832_vm5 = vcmp.gt.f32.partialorder %v1824_v17, 0.0  ;;  %v1840_v58 = vmul.f32 0.2, %v1824_v17 }
 0x9d8   :  { %vm1833_vm6 = vcmp.gt.f32.partialorder %v1825_v28, 0.0  ;;  %v1841_v48 = vmul.f32 0.2, %v1825_v28  ;;  %v2085_v18 = vmul.f32 0.2, %v2069_v49  ;;  %vm2077_vm7 = vcmp.gt.f32.partialorder %v2069_v49, 0.0 }
 0x9d9   :  { %v2097_v42 = vsel %vm2081_vm4, %v2073_v30, %v2089_v12  ;;  %v1848_v55 = vsel %vm1832_vm5, %v1824_v17, %v1840_v58  ;;  %v2086_v19 = vmul.f32 0.2, %v2070_v56  ;;  %vm2078_vm8 = vcmp.gt.f32.partialorder %v2070_v56, 0.0  ;;  %v2881_v30 = vld [vmem:[%s3915_s1 + $0x20] sm:$0xff]  ;;  %v2882_v12 = vld [vmem:[%s3915_s1 + $0x28] sm:$0xff] }
 0x9da   :  { %v3712_v36 = vadd.f32 %v3456_v61, %v2097_v42  ;;  %v3717_v60 = vadd.f32 %v2877_v46, %v1848_v55  ;;  %v1849_v10 = vsel %vm1833_vm6, %v1825_v28, %v1841_v48  ;;  %v2093_v3 = vsel %vm2077_vm7, %v2069_v49, %v2085_v18 }
 0x9db   :  { %v3726_v61 = vadd.f32 %v2878_v29, %v1849_v10  ;;  %v3731_v38 = vadd.f32 %v2877_v46, %v2093_v3  ;;  %v2094_v16 = vsel %vm2078_vm8, %v2070_v56, %v2086_v19  ;;  %v1842_v7 = vmul.f32 0.2, %v1826_v34 }
 0x9dc   :  { %v2121_v4 = vsel %vm277_vm1, %v3712_v36, -inf  ;;  %v1864_v44 = vsel %vm277_vm1, %v3717_v60, -inf  ;;  %vm1834_vm9 = vcmp.gt.f32.partialorder %v1826_v34, 0.0  ;;  %v3737_v14 = vadd.f32 %v2878_v29, %v2094_v16 }
 0x9dd   :  { %2122 = vmax.xlane.f32.xlu1 %v2121_v4  ;;  %1865 = vmax.xlane.f32.xlu0 %v1864_v44  ;;  %v1867_v23 = vsel %vm277_vm1, %v3726_v61, -inf  ;;  %v2109_v8 = vsel %vm277_vm1, %v3731_v38, -inf  ;;  %v1850_v24 = vsel %vm1834_vm9, %v1826_v34, %v1842_v7  ;;  %v1843_v45 = vmul.f32 0.2, %v1827_v27  ;;  %v2884_v34 = vld [vmem:[%s3915_s1 + $0x38] sm:$0xff] }
 0x9de   :  { %v2071_v31 = vadd.f32 %v3704_v50, %v3686_v59  ;;  %vm1835_vm10 = vcmp.gt.f32.partialorder %v1827_v27, 0.0  ;;  %v2112_v33 = vsel %vm277_vm1, %v3737_v14, -inf  ;;  %v3746_v57 = vadd.f32 %v2879_v21, %v1850_v24 }
 0x9df   :  { %v1851_v52 = vsel %vm1835_vm10, %v1827_v27, %v1843_v45  ;;  %v2072_v26 = vadd.f32 %v3704_v50, %v3688_v11  ;;  %v1828_v20 = vadd.f32 %v3701_v63, %v3694_v6  ;;  %v1810_v11 = vpop.permute.xlu0 %1809  ;;  %v2090_v42 = vmul.f32 0.2, %v2074_v43 }
 0x9e0   :  { %v2087_v13 = vmul.f32 0.2, %v2071_v31  ;;  %vm2079_vm11 = vcmp.gt.f32.partialorder %v2071_v31, 0.0  ;;  %v1870_v59 = vsel %vm277_vm1, %v3746_v57, -inf  ;;  %v3755_v62 = vadd.f32 %v2880_v22, %v1851_v52 }
 0x9e1   :  { %1868 = vmax.xlane.f32.xlu0 %v1867_v23  ;;  %v2088_v5 = vmul.f32 0.2, %v2072_v26  ;;  %vm2080_vm12 = vcmp.gt.f32.partialorder %v2072_v26, 0.0  ;;  %v1844_v25 = vmul.f32 0.2, %v1828_v20  ;;  %v1829_v35 = vadd.f32 %v3701_v63, %v1810_v11 }
 0x9e2   :  { %v2095_v40 = vsel %vm2079_vm11, %v2071_v31, %v2087_v13  ;;  %v1873_v32 = vsel %vm277_vm1, %v3755_v62, -inf  ;;  %vm1836_vm13 = vcmp.gt.f32.partialorder %v1828_v20, 0.0  ;;  %v1830_v55 = vadd.f32 %v3701_v63, %v3690_v0  ;;  %v2883_v0 = vld [vmem:[%s3915_s1 + $0x30] sm:$0xff] }
 0x9e3   :  { %v3763_v39 = vadd.f32 %v2879_v21, %v2095_v40  ;;  %v2096_v47 = vsel %vm2080_vm12, %v2072_v26, %v2088_v5  ;;  %v1845_v51 = vmul.f32 0.2, %v1829_v35  ;;  %vm1837_vm14 = vcmp.gt.f32.partialorder %v1829_v35, 0.0 }
 0x9e4   :  { %v3768_v6 = vadd.f32 %v2880_v22, %v2096_v47  ;;  %vm2082_vm15 = vcmp.gt.f32.partialorder %v2074_v43, 0.0  ;;  %v1846_v56 = vmul.f32 0.2, %v1830_v55  ;;  %v1831_v46 = vadd.f32 %v3701_v63, %v3696_v37 }
 0x9e5   :  { %2110 = vmax.xlane.f32.xlu0 %v2109_v8  ;;  %v2115_v15 = vsel %vm277_vm1, %v3763_v39, -inf  ;;  %v1853_v28 = vsel %vm1837_vm14, %v1829_v35, %v1845_v51  ;;  %v2098_v18 = vsel %vm2082_vm15, %v2074_v43, %v2090_v42  ;;  %vm1838_vm0 = vcmp.gt.f32.partialorder %v1830_v55, 0.0 }
 0x9e6   :  { %v2118_v54 = vsel %vm277_vm1, %v3768_v6, -inf  ;;  %v3782_v58 = vadd.f32 %v2882_v12, %v1853_v28  ;;  %v3792_v10 = vadd.f32 %v2882_v12, %v2098_v18  ;;  %v1854_v4 = vsel %vm1838_vm0, %v1830_v55, %v1846_v56 }
 0x9e7   :  { %v1847_v44 = vmul.f32 0.2, %v1831_v46  ;;  %v2075_v29 = vadd.f32 %v3704_v50, %v3692_v2  ;;  %vm1839_vm2 = vcmp.gt.f32.partialorder %v1831_v46, 0.0  ;;  %v3801_v3 = vadd.f32 %v2883_v0, %v1854_v4 }
 0x9e8   :  { %v1879_v48 = vsel %vm277_vm1, %v3782_v58, -inf  ;;  %v2076_v19 = vadd.f32 %v3704_v50, %v3698_v1 }
 0x9e9   :  { %2113 = vmax.xlane.f32.xlu0 %v2112_v33  ;;  %v1855_v37 = vsel %vm1839_vm2, %v1831_v46, %v1847_v44  ;;  %v2091_v63 = vmul.f32 0.2, %v2075_v29  ;;  %vm2083_vm3 = vcmp.gt.f32.partialorder %v2075_v29, 0.0  ;;  %v1882_v2 = vsel %vm277_vm1, %v3801_v3, -inf }
 0x9ea   :  { %v3810_v23 = vadd.f32 %v2884_v34, %v1855_v37  ;;  %v2092_v16 = vmul.f32 0.2, %v2076_v19  ;;  %vm2084_vm4 = vcmp.gt.f32.partialorder %v2076_v19, 0.0 }
 0x9eb   :  { %v2099_v43 = vsel %vm2083_vm3, %v2075_v29, %v2091_v63 }
 0x9ec   :  { %v1885_v7 = vsel %vm277_vm1, %v3810_v23, -inf  ;;  %v3814_v27 = vadd.f32 %v2883_v0, %v2099_v43  ;;  %v2100_v1 = vsel %vm2084_vm4, %v2076_v19, %v2092_v16 }
 0x9ed   :  { %1871 = vmax.xlane.f32.xlu0 %v1870_v59  ;;  %v3818_v8 = vadd.f32 %v2884_v34, %v2100_v1 }
 0x9ee   :  { %2199 = vrot.lane.b32.xlu1 %v3661_v53, %s2892_s7  ;;  %v1852_v53 = vsel %vm1836_vm13, %v1828_v20, %v1844_v25  ;;  %v2127_v50 = vsel %vm277_vm1, %v3814_v27, -inf }
 0x9ef   :  { %v3775_v17 = vadd.f32 %v2881_v30, %v1852_v53  ;;  %v2130_v24 = vsel %vm277_vm1, %v3818_v8, -inf }
 0x9f1   :  { %1874 = vmax.xlane.f32.xlu0 %v1873_v32  ;;  %v1876_v49 = vsel %vm277_vm1, %v3775_v17, -inf }
 0x9f5   :  { %2116 = vmax.xlane.f32.xlu0 %v2115_v15 }
 0x9f9   :  { %2119 = vmax.xlane.f32.xlu0 %v2118_v54 }
 0x9fd   :  { %1877 = vmax.xlane.f32.xlu0 %v1876_v49 }
 0xa01   :  { %1880 = vmax.xlane.f32.xlu0 %v1879_v48 }
 0xa17   :  { %2201 = vrot.lane.b32.xlu0 %v3670_v9, %s2892_s7  ;;  %v2124_v9 = vsel %vm277_vm1, %v3792_v10, -inf }
 0xa36   :  { %2125 = vmax.xlane.f32.xlu0 %v2124_v9 }
 0xa3a   :  { %1883 = vmax.xlane.f32.xlu0 %v1882_v2 }
 0xa3e   :  { %1886 = vmax.xlane.f32.xlu0 %v1885_v7 }
 0xa42   :  { %2128 = vmax.xlane.f32.xlu0 %v2127_v50 }
 0xa46   :  { %2131 = vmax.xlane.f32.xlu0 %v2130_v24 }
 0xa5c   :  { %2203 = vrot.lane.b32.xlu0 %v3667_v41, %s2892_s7 }
 0xa6a   :  { %v3824_v45 = vpop.xlane.xlu1 %2122  ;;  %v1866_v31 = vpop.xlane.xlu0 %1865 }
 0xa6b   :  { %v1888_v33 = vsub.f32 %v3717_v60, %v1866_v31  ;;  %v2137_v31 = vsub.f32 %v3712_v36, %v3824_v45 }
 0xa6d   :  { %v1896_v21 = vmul.f32 1.442695, %v1888_v33 }
 0xa6e   :  { %v2200_v52 = vpop.permute.xlu1 %2199  ;;  %v1869_v13 = vpop.xlane.xlu0 %1868 }
 0xa6f   :  { %v1889_v26 = vsub.f32 %v3726_v61, %v1869_v13  ;;  %2579 = vmatprep.subr.bf16.mxu0 %v2200_v52  ;;  %2805 = vpow2.f32 %v1896_v21 }
 0xa70   :  { %2580 = vmatpush3.bf16.msra.mxu0 %v2200_v52 }
 0xa71   :  { %v1898_v59 = vmul.f32 1.442695, %v1889_v26  ;;  %v2149_v26 = vmul.f32 1.442695, %v2137_v31 }
 0xa72   :  { %v2111_v22 = vpop.xlane.xlu0 %2110 }
 0xa73   :  { %2807 = vpow2.f32 %v1898_v59  ;;  %v2133_v40 = vsub.f32 %v3731_v38, %v2111_v22 }
 0xa75   :  { %v2141_v5 = vmul.f32 1.442695, %v2133_v40 }
 0xa76   :  { %v2114_v41 = vpop.xlane.xlu0 %2113 }
 0xa77   :  { %v2134_v20 = vsub.f32 %v3737_v14, %v2114_v41  ;;  %2809 = vpow2.f32 %v2141_v5 }
 0xa79   :  { %v2143_v11 = vmul.f32 1.442695, %v2134_v20  ;;  %v2806_v32 = vpop.eup %2805 }
 0xa7a   :  { %v1872_v60 = vpop.xlane.xlu0 %1871  ;;  %v1912_v61 = vsel %vm277_vm1, %v2806_v32, 0.0 }
 0xa7b   :  { %2811 = vpow2.f32 %v2143_v11  ;;  %v1890_v47 = vsub.f32 %v3746_v57, %v1872_v60  ;;  %1913 = vadd.xlane.f32.xlu0 %v1912_v61 }
 0xa7d   :  { %v2808_v25 = vpop.eup %2807  ;;  %v1900_v35 = vmul.f32 1.442695, %v1890_v47 }
 0xa7e   :  { %v1875_v15 = vpop.xlane.xlu0 %1874  ;;  %v1915_v53 = vsel %vm277_vm1, %v2808_v25, 0.0  ;;  %v1944_v38 = vpack.c.bf16 %v2808_v25, %v2806_v32 }
 0xa7f   :  { %2813 = vpow2.f32 %v1900_v35  ;;  %v1891_v51 = vsub.f32 %v3755_v62, %v1875_v15  ;;  %1916 = vadd.xlane.f32.xlu1 %v1915_v53 }
 0xa80   :  { %2569 = vmatprep.mubr.msk.bf16.mxu1 %vm277_vm1, %v1944_v38 }
 0xa81   :  { %v1902_v14 = vmul.f32 1.442695, %v1891_v51  ;;  %v3836_v30 = vpop.eup %2809 }
 0xa82   :  { %v2117_v54 = vpop.xlane.xlu0 %2116 }
 0xa83   :  { %2815 = vpow2.f32 %v1902_v14  ;;  %v2135_v57 = vsub.f32 %v3763_v39, %v2117_v54 }
 0xa85   :  { %v3838_v28 = vpop.eup %2811  ;;  %v2145_v49 = vmul.f32 1.442695, %v2135_v57 }
 0xa86   :  { %v2120_v12 = vpop.xlane.xlu0 %2119  ;;  %v2189_v48 = vpack.c.bf16 %v3838_v28, %v3836_v30  ;;  %v2160_v25 = vsel %vm277_vm1, %v3838_v28, 0.0 }
 0xa87   :  { %v2136_v42 = vsub.f32 %v3768_v6, %v2120_v12  ;;  %2817 = vpow2.f32 %v2145_v49 }
 0xa88   :  { %2585 = vmatprep.mubr.msk.bf16.mxu0 %vm277_vm1, %v2189_v48 }
 0xa89   :  { %v2814_v62 = vpop.eup %2813  ;;  %v2147_v55 = vmul.f32 1.442695, %v2136_v42 }
 0xa8a   :  { %v1878_v18 = vpop.xlane.xlu0 %1877  ;;  %v1918_v56 = vsel %vm277_vm1, %v2814_v62, 0.0 }
 0xa8b   :  { %2819 = vpow2.f32 %v2147_v55  ;;  %v1892_v39 = vsub.f32 %v3775_v17, %v1878_v18  ;;  %1919 = vadd.xlane.f32.xlu0 %v1918_v56 }
 0xa8d   :  { %v2816_v46 = vpop.eup %2815  ;;  %v1904_v4 = vmul.f32 1.442695, %v1892_v39 }
 0xa8e   :  { %v1945_v44 = vpack.c.bf16 %v2816_v46, %v2814_v62  ;;  %v1881_v29 = vpop.xlane.xlu0 %1880  ;;  %v1921_v9 = vsel %vm277_vm1, %v2816_v46, 0.0 }
 0xa8f   :  { %2821 = vpow2.f32 %v1904_v4  ;;  %v1893_v6 = vsub.f32 %v3782_v58, %v1881_v29  ;;  %1922 = vadd.xlane.f32.xlu0 %v1921_v9 }
 0xa90   :  { %2570 = vmatmul.mubr.msk.bf16.vlgmr.msra.gmra.mrb[32].mxu1 %vm277_vm1, %v1945_v44 }
 0xa91   :  { %v1906_v0 = vmul.f32 1.442695, %v1893_v6  ;;  %v2818_v63 = vpop.eup %2817 }
 0xa92   :  { %v2202_v37 = vpop.permute.xlu0 %2201  ;;  %v2163_v61 = vsel %vm277_vm1, %v2818_v63, 0.0 }
 0xa93   :  { %2823 = vpow2.f32 %v1906_v0  ;;  %2581 = vmatprep.subr.bf16.mxu0 %v2202_v37 }
 0xa94   :  { %2582 = vmatpush3.bf16.msra.mxu0 %v2202_v37 }
 0xa95   :  { %v2820_v17 = vpop.eup %2819 }
 0xa96   :  { %v2190_v19 = vpack.c.bf16 %v2820_v17, %v2818_v63  ;;  %v2166_v38 = vsel %vm277_vm1, %v2820_v17, 0.0 }
 0xa99   :  { %v2822_v2 = vpop.eup %2821 }
 0xa9a   :  { %v1924_v34 = vsel %vm277_vm1, %v2822_v2, 0.0 }
 0xa9b   :  { %1925 = vadd.xlane.f32.xlu0 %v1924_v34 }
 0xa9d   :  { %v2824_v43 = vpop.eup %2823 }
 0xa9e   :  { %v1927_v16 = vsel %vm277_vm1, %v2824_v43, 0.0  ;;  %v1946_v7 = vpack.c.bf16 %v2824_v43, %v2822_v2 }
 0xa9f   :  { %1928 = vadd.xlane.f32.xlu1 %v1927_v16 }
 0xaa0   :  { %2573 = vmatprep.mubr.msk.bf16.mxu1 %vm277_vm1, %v1946_v7 }
 0xac3   :  { %v2126_v58 = vpop.xlane.xlu0 %2125 }
 0xac4   :  { %v2138_v1 = vsub.f32 %v3792_v10, %v2126_v58 }
 0xac6   :  { %v2151_v21 = vmul.f32 1.442695, %v2138_v1 }
 0xac7   :  { %v1884_v50 = vpop.xlane.xlu0 %1883 }
 0xac8   :  { %v1894_v24 = vsub.f32 %v3801_v3, %v1884_v50 }
 0xaca   :  { %v1908_v33 = vmul.f32 1.442695, %v1894_v24 }
 0xacb   :  { %v1887_v52 = vpop.xlane.xlu0 %1886 }
 0xacc   :  { %2825 = vpow2.f32 %v1908_v33  ;;  %v1895_v13 = vsub.f32 %v3810_v23, %v1887_v52 }
 0xacd   :  { %2827 = vpow2.f32 %v2151_v21 }
 0xace   :  { %v1910_v59 = vmul.f32 1.442695, %v1895_v13 }
 0xacf   :  { %v2129_v22 = vpop.xlane.xlu0 %2128 }
 0xad0   :  { %2829 = vpow2.f32 %v1910_v59  ;;  %v2139_v40 = vsub.f32 %v3814_v27, %v2129_v22  ;;  %v2157_v27 = vsel %vm277_vm1, %v3836_v30, 0.0 }
 0xad1   :  { %2831 = vpow2.f32 %v2149_v26 }
 0xad2   :  { %v2153_v10 = vmul.f32 1.442695, %v2139_v40 }
 0xad3   :  { %v2132_v5 = vpop.xlane.xlu0 %2131 }
 0xad4   :  { %v2140_v3 = vsub.f32 %v3818_v8, %v2132_v5  ;;  %2833 = vpow2.f32 %v2153_v10 }
 0xad6   :  { %v2826_v41 = vpop.eup %2825  ;;  %v2155_v36 = vmul.f32 1.442695, %v2140_v3 }
 0xad7   :  { %v2204_v45 = vpop.permute.xlu0 %2203  ;;  %v1930_v20 = vsel %vm277_vm1, %v2826_v41, 0.0  ;;  %v2828_v23 = vpop.eup %2827 }
 0xad8   :  { %2835 = vpow2.f32 %v2155_v36  ;;  %1931 = vadd.xlane.f32.xlu0 %v1930_v20  ;;  %2583 = vmatprep.subr.bf16.mxu0 %v2204_v45  ;;  %v2172_v14 = vsel %vm277_vm1, %v2828_v23, 0.0 }
 0xad9   :  { %2584 = vmatpush3.bf16.msra.mxu0 %v2204_v45  ;;  %v2411_v45 = vld [vmem:[%s3922_s9] ss:$0 sm:$0xff] }
 0xada   :  { %v2830_v11 = vpop.eup %2829 }
 0xadb   :  { %v2832_v32 = vpop.eup %2831  ;;  %v1933_v60 = vsel %vm277_vm1, %v2830_v11, 0.0  ;;  %v1947_v47 = vpack.c.bf16 %v2830_v11, %v2826_v41 }
 0xadc   :  { %2158 = vadd.xlane.f32.xlu0 %v2157_v27  ;;  %1934 = vadd.xlane.f32.xlu1 %v1933_v60  ;;  %v2191_v8 = vpack.c.bf16 %v2828_v23, %v2832_v32  ;;  %v2169_v53 = vsel %vm277_vm1, %v2832_v32, 0.0 }
 0xadd   :  { %2586 = vmatmul.mubr.msk.bf16.vlgmr.msra.gmra.mrb[40].mxu0 %vm277_vm1, %v2190_v19  ;;  %2574 = vmatmul.mubr.msk.bf16.gmra.mrb[36].mxu1 %vm277_vm1, %v1947_v47  ;;  %v2412_v47 = vld [vmem:[%s3923_s10] ss:$0 sm:$0xff] }
 0xade   :  { %2589 = vmatprep.mubr.msk.bf16.mxu0 %vm277_vm1, %v2191_v8  ;;  %v2834_v35 = vpop.eup %2833 }
 0xadf   :  { %v2175_v54 = vsel %vm277_vm1, %v2834_v35, 0.0 }
 0xae0   :  { %2164 = vadd.xlane.f32.xlu0 %v2163_v61  ;;  %2161 = vadd.xlane.f32.xlu1 %v2160_v25 }
 0xae2   :  { %v2836_v15 = vpop.eup %2835 }
 0xae3   :  { %v2192_v51 = vpack.c.bf16 %v2836_v15, %v2834_v35  ;;  %v2178_v57 = vsel %vm277_vm1, %v2836_v15, 0.0 }
 0xae4   :  { %2170 = vadd.xlane.f32.xlu0 %v2169_v53  ;;  %2167 = vadd.xlane.f32.xlu1 %v2166_v38 }
 0xae5   :  { %2590 = vmatmul.mubr.msk.bf16.gmra.mrb[44].mxu0 %vm277_vm1, %v2192_v51  ;;  %vm2340_vm1 = vcmask 64512  }
 0xae8   :  { %2173 = vadd.xlane.f32.xlu1 %v2172_v14  ;;  %2176 = vadd.xlane.f32.xlu0 %v2175_v54 }
 0xaec   :  { %2179 = vadd.xlane.f32.xlu1 %v2178_v57 }
 0xb08   :  { %v1914_v48 = vpop.xlane.xlu0 %1913 }
 0xb09   :  { %2837 = vrcp.f32 %v1914_v48 }
 0xb0c   :  { %v1917_v55 = vpop.xlane.xlu1 %1916 }
 0xb0d   :  { %2839 = vrcp.f32 %v1917_v55 }
 0xb13   :  { %v2838_v63 = vpop.eup %2837 }
 0xb17   :  { %v2840_v17 = vpop.eup %2839 }
 0xb18   :  { %v1920_v42 = vpop.xlane.xlu0 %1919 }
 0xb19   :  { %2841 = vrcp.f32 %v1920_v42 }
 0xb1c   :  { %v1923_v62 = vpop.xlane.xlu0 %1922 }
 0xb1d   :  { %2843 = vrcp.f32 %v1923_v62 }
 0xb23   :  { %v2842_v2 = vpop.eup %2841 }
 0xb27   :  { %v2844_v34 = vpop.eup %2843 }
 0xb28   :  { %v1926_v18 = vpop.xlane.xlu0 %1925 }
 0xb2c   :  { %v1929_v56 = vpop.xlane.xlu1 %1928 }
 0xb63   :  { %v2571_v30 = vpop.f32.mrb[32].mxu1 }
 0xb64   :  { %v1994_v28 = vpop.f32.mrb[33].mxu1  ;;  %v2027_v1 = vmul.f32 %v2842_v2, %v2571_v30 }
 0xb65   :  { %v2572_v49 = vpop.f32.mrb[34].mxu1  ;;  %v1932_v39 = vpop.xlane.xlu0 %1931  ;;  %v2025_v21 = vmul.f32 %v2838_v63, %v1994_v28 }
 0xb66   :  { %v1997_v12 = vpop.f32.mrb[35].mxu1  ;;  %v2028_v22 = vmul.f32 %v2844_v34, %v2572_v49 }
 0xb67   :  { %v2026_v36 = vmul.f32 %v2840_v17, %v1997_v12 }
 0xb69   :  { %v1935_v46 = vpop.xlane.xlu1 %1934  ;;  %v2159_v4 = vpop.xlane.xlu0 %2158 }
 0xb6d   :  { %v2162_v44 = vpop.xlane.xlu1 %2161  ;;  %v2165_v29 = vpop.xlane.xlu0 %2164 }
 0xb6e   :  { %2845 = vrcp.f32 %v2165_v29 }
 0xb6f   :  { %2847 = vrcp.f32 %v2159_v4 }
 0xb71   :  { %v2168_v9 = vpop.xlane.xlu1 %2167  ;;  %v2171_v6 = vpop.xlane.xlu0 %2170 }
 0xb72   :  { %2849 = vrcp.f32 %v2168_v9 }
 0xb73   :  { %2851 = vrcp.f32 %v2162_v44 }
 0xb74   :  { %2853 = vrcp.f32 %v1926_v18 }
 0xb75   :  { %v2174_v0 = vpop.xlane.xlu1 %2173  ;;  %2855 = vrcp.f32 %v1929_v56  ;;  %v2177_v37 = vpop.xlane.xlu0 %2176 }
 0xb76   :  { %2857 = vrcp.f32 %v1932_v39 }
 0xb77   :  { %2859 = vrcp.f32 %v1935_v46 }
 0xb78   :  { %2861 = vrcp.f32 %v2177_v37  ;;  %v2846_v43 = vpop.eup %2845 }
 0xb79   :  { %v2180_v19 = vpop.xlane.xlu1 %2179  ;;  %2863 = vrcp.f32 %v2171_v6  ;;  %v2848_v58 = vpop.eup %2847 }
 0xb7a   :  { %2865 = vrcp.f32 %v2180_v19 }
 0xb7b   :  { %2867 = vrcp.f32 %v2174_v0 }
 0xb7c   :  { %v2850_v33 = vpop.eup %2849 }
 0xb7d   :  { %v2852_v59 = vpop.eup %2851 }
 0xb7e   :  { %v2854_v41 = vpop.eup %2853 }
 0xb7f   :  { %v2856_v11 = vpop.eup %2855 }
 0xb80   :  { %v2858_v60 = vpop.eup %2857 }
 0xb81   :  { %v2860_v25 = vpop.eup %2859 }
 0xb82   :  { %v2862_v53 = vpop.eup %2861 }
 0xb83   :  { %v2864_v54 = vpop.eup %2863 }
 0xb84   :  { %v2866_v48 = vpop.eup %2865 }
 0xb85   :  { %v2868_v39 = vpop.eup %2867 }
 0xbb0   :  { %v2587_v16 = vpop.f32.mrb[40].mxu0  ;;  %v2575_v7 = vpop.f32.mrb[36].mxu1 }
 0xbb1   :  { %v2288_v50 = vmul.f32 %v2846_v43, %v2587_v16  ;;  %v2255_v24 = vpop.f32.mrb[41].mxu0  ;;  %v2010_v31 = vpop.f32.mrb[37].mxu1  ;;  %v2031_v30 = vmul.f32 %v2858_v60, %v2575_v7 }
 0xbb2   :  { %v2286_v52 = vmul.f32 %v2848_v58, %v2255_v24  ;;  %v2588_v13 = vpop.f32.mrb[42].mxu0  ;;  %v2576_v26 = vpop.f32.mrb[38].mxu1  ;;  %v2029_v62 = vmul.f32 %v2854_v41, %v2010_v31 }
 0xbb3   :  { %v2296_v40 = vadd.f32 %v2288_v50, %v2027_v1  ;;  %v2289_v10 = vmul.f32 %v2850_v33, %v2588_v13  ;;  %v2258_v5 = vpop.f32.mrb[43].mxu0  ;;  %v2013_v3 = vpop.f32.mrb[39].mxu1  ;;  %v2032_v4 = vmul.f32 %v2860_v25, %v2576_v26 }
 0xbb4   :  { %v2294_v20 = vadd.f32 %v2286_v52, %v2025_v21  ;;  %v2287_v23 = vmul.f32 %v2852_v59, %v2258_v5  ;;  %v2030_v0 = vmul.f32 %v2856_v11, %v2013_v3 }
 0xbb5   :  { %v2304_v32 = vmul.f32 0.5, %v2296_v40  ;;  %v2297_v27 = vadd.f32 %v2289_v10, %v2028_v22 }
 0xbb6   :  { %v2302_v8 = vmul.f32 0.5, %v2294_v20  ;;  %v2295_v61 = vadd.f32 %v2287_v23, %v2026_v36 }
 0xbb7   :  { %v2319_v35 = vmul.f32 %v2411_v45, %v2304_v32  ;;  %v2305_v15 = vmul.f32 0.5, %v2297_v27 }
 0xbb8   :  { %v2317_v38 = vmul.f32 %v2411_v45, %v2302_v8  ;;  %v2303_v51 = vmul.f32 0.5, %v2295_v61  ;;  %v2591_v14 = vpop.f32.mrb[44].mxu0 }
 0xbb9   :  { %v2334_v57 = vadd.f32 %v2412_v47, %v2319_v35  ;;  %v2320_v28 = vmul.f32 %v2411_v45, %v2305_v15  ;;  %v2292_v49 = vmul.f32 %v2862_v53, %v2591_v14  ;;  %v2271_v12 = vpop.f32.mrb[45].mxu0 }
 0xbba   :  { %v2332_v42 = vadd.f32 %v2412_v47, %v2317_v38  ;;  %v2318_v55 = vmul.f32 %v2411_v45, %v2303_v51  ;;  %v2290_v18 = vmul.f32 %v2864_v54, %v2271_v12  ;;  %v2592_v56 = vpop.f32.mrb[46].mxu0 }
 0xbbb   :  { %2343 = vst.msk [vmem:[%s3924_s11 + $0x10] sm:$0xff] %vm2340_vm1, %v2334_v57  ;;  %v2335_v46 = vadd.f32 %v2412_v47, %v2320_v28  ;;  %v2300_v44 = vadd.f32 %v2292_v49, %v2031_v30  ;;  %v2293_v29 = vmul.f32 %v2866_v48, %v2592_v56  ;;  %v2274_v9 = vpop.f32.mrb[47].mxu0 }
 0xbbc   :  { %2341 = vst.msk [vmem:[%s3924_s11] sm:$0xff] %vm2340_vm1, %v2332_v42  ;;  %v2333_v6 = vadd.f32 %v2412_v47, %v2318_v55  ;;  %v2298_v37 = vadd.f32 %v2290_v18, %v2029_v62  ;;  %v2291_v63 = vmul.f32 %v2868_v39, %v2274_v9 }
 0xbbd   :  { %2344 = vst.msk [vmem:[%s3924_s11 + $0x18] sm:$0xff] %vm2340_vm1, %v2335_v46  ;;  %v2308_v17 = vmul.f32 0.5, %v2300_v44  ;;  %v2301_v19 = vadd.f32 %v2293_v29, %v2032_v4 }
 0xbbe   :  { %2342 = vst.msk [vmem:[%s3924_s11 + $0x8] sm:$0xff] %vm2340_vm1, %v2333_v6  ;;  %v2306_v2 = vmul.f32 0.5, %v2298_v37  ;;  %v2299_v34 = vadd.f32 %v2291_v63, %v2030_v0 }
 0xbbf   :  { %v2323_v43 = vmul.f32 %v2411_v45, %v2308_v17  ;;  %v2309_v16 = vmul.f32 0.5, %v2301_v19 }
 0xbc0   :  { %v2321_v7 = vmul.f32 %v2411_v45, %v2306_v2  ;;  %v2307_v58 = vmul.f32 0.5, %v2299_v34 }
 0xbc1   :  { %v2338_v1 = vadd.f32 %v2412_v47, %v2323_v43  ;;  %v2324_v50 = vmul.f32 %v2411_v45, %v2309_v16 }
 0xbc2   :  { %v2336_v24 = vadd.f32 %v2412_v47, %v2321_v7  ;;  %v2322_v31 = vmul.f32 %v2411_v45, %v2307_v58 }
 0xbc3   :  { %2347 = vst.msk [vmem:[%s3924_s11 + $0x30] sm:$0xff] %vm2340_vm1, %v2338_v1  ;;  %v2339_v33 = vadd.f32 %v2412_v47, %v2324_v50 }
 0xbc4   :  { %2345 = vst.msk [vmem:[%s3924_s11 + $0x20] sm:$0xff] %vm2340_vm1, %v2336_v24  ;;  %v2337_v21 = vadd.f32 %v2412_v47, %v2322_v31 }
 0xbc5   :  { %2348 = vst.msk [vmem:[%s3924_s11 + $0x38] sm:$0xff] %vm2340_vm1, %v2339_v33 }
 0xbc6   :  { %2346 = vst.msk [vmem:[%s3924_s11 + $0x28] sm:$0xff] %vm2340_vm1, %v2337_v21 }

</bundles_post_ra>
